<compile_context>
chip_gen: v6e
topology: v6e:2x2x1
jax: 0.10.0
libtpu: 0.0.40
codegen_flags: <defaults>
</compile_context>

<pallas_src>
import jax
import jax.numpy as jnp
import numpy as np
from jax import lax
from jax.experimental import pallas as pl
from jax.experimental.pallas import tpu as pltpu


def _round_up(v, m):
    return (v + m - 1) // m * m


# ------------------------------ Pallas kernel -------------------------------

def _lenet5_kernel(x_ref, w1_ref, b1_ref, q1_ref, w2_ref, b2_ref, q2_ref,
                   fw1_ref, fb1_ref, fw2_ref, fb2_ref, fw3_ref, fb3_ref,
                   o_ref):
    """Fused LeNet-5 forward for one tile of BB images.

    Row/column layouts (BB = images per grid step):
      x_ref : (8, BB, 128)  row i8 holds original image rows 4*i8 .. 4*i8+3
      conv1 : rows (i7, b), i7 in 0..6 ; cols t*168 + ow*6 + co   (oh = 4*i7+t)
      pool1 : rows (i7, b)             ; cols r*84 + ow14*6 + ci  (oh14 = 2*i7+r)
      conv2 : rows (o5, b), o5 in 0..4 ; cols p*160 + ow10*16 + co (oh10 = 2*o5+p)
      pool2 : rows (o5, b)             ; cols ow5*16 + co
      feat  : rows b                   ; cols o5*80 + ow5*16 + co
    """
    f32, bf16 = jnp.float32, jnp.bfloat16
    relu = lambda v: jnp.maximum(v, 0.0)
    bb = o_ref.shape[0]

    # -------- conv1 (+bias, ReLU) as one banded matmul over 7 coarse rows ----
    rows = [x_ref[i].astype(bf16) for i in range(8)]            # 8 x (BB, 128)
    l1 = jnp.concatenate(
        [jnp.concatenate([rows[i], rows[i + 1]], axis=1) for i in range(7)],
        axis=0)                                                 # (7*BB, 256)
    c1 = relu(jnp.dot(l1, w1_ref[...], preferred_element_type=f32)
              + b1_ref[...])                                    # (7*BB, 672)

    # -------- 2x2 avg-pool #1: pure lane-side constant matmul ----------------
    p1 = jnp.dot(c1.astype(bf16), q1_ref[...],
                 preferred_element_type=f32).astype(bf16)       # (7*BB, 168)

    # -------- conv2 (+bias, ReLU): 3 adjacent coarse rows per output row -----
    l2 = jnp.concatenate(
        [jnp.concatenate([p1[(o + j) * bb:(o + j + 1) * bb, :]
                          for j in range(3)], axis=1)
         for o in range(5)], axis=0)                            # (5*BB, 504)
    c2 = relu(jnp.dot(l2, w2_ref[...], preferred_element_type=f32)
              + b2_ref[...])                                    # (5*BB, 320)

    # -------- 2x2 avg-pool #2: pure lane-side constant matmul ----------------
    p2 = jnp.dot(c2.astype(bf16), q2_ref[...],
                 preferred_element_type=f32).astype(bf16)       # (5*BB, 80)

    # -------- flatten to (BB, 400) -------------------------------------------
    feat = jnp.concatenate([p2[o * bb:(o + 1) * bb, :] for o in range(5)],
                           axis=1)                              # (BB, 400)

    # -------- fully connected head -------------------------------------------
    h = relu(jnp.dot(feat, fw1_ref[...], preferred_element_type=f32)
             + fb1_ref[...])                                    # (BB, 120)
    h = relu(jnp.dot(h.astype(bf16), fw2_ref[...], preferred_element_type=f32)
             + fb2_ref[...])                                    # (BB, 84)
    o_ref[...] = (jnp.dot(h.astype(bf16), fw3_ref[...],
                          preferred_element_type=f32)
                  + fb3_ref[...])                               # (BB, 128)


# --------------------------------- wrapper -----------------------------------

def _const(shape):
    """Whole-array block, constant index map (DMA'd once, not per step)."""
    return pl.BlockSpec(shape, lambda i, _s=len(shape): (0,) * _s)


def lenet5_forward(x_nchw, params, *, block_batch=128):
    """x_nchw: (N, 1, 32, 32) float -> logits (N, 10)."""
    n = x_nchw.shape[0]
    bb = min(block_batch, _round_up(n, 8))
    bb = max(8, (bb // 8) * 8)
    n_pad = _round_up(n, bb)

    x = x_nchw.astype(jnp.float32).reshape(n, 32, 32)           # Cin == 1
    if n_pad != n:
        x = jnp.pad(x, ((0, n_pad - n), (0, 0), (0, 0)))
    # Fold groups of 4 image rows into the 128 lanes and put the coarse-row
    # axis first, so the kernel only indexes the untiled leading dim.
    xr = x.reshape(n_pad, 8, 128).transpose(1, 0, 2)            # (8, n_pad, 128)

    flops_img = 2 * (7 * 256 * 672 + 7 * 672 * 168 + 5 * 504 * 320
                     + 5 * 320 * 80 + 400 * 120 + 120 * 84 + 84 * 128)
    w_bytes = int(sum(int(np.prod(v.shape)) * v.dtype.itemsize
                      for v in params.values()))
    cost = pl.CostEstimate(flops=int(n_pad * flops_img), transcendentals=0,
                           bytes_accessed=int(n_pad * (8 * 128 + 128) * 4
                                              + w_bytes))

    out = pl.pallas_call(
        _lenet5_kernel,
        out_shape=jax.ShapeDtypeStruct((n_pad, 128), jnp.float32),
        grid=(n_pad // bb,),
        in_specs=[
            pl.BlockSpec((8, bb, 128), lambda i: (0, i, 0)),    # batch tile
            _const((256, 672)), _const((1, 672)), _const((672, 168)),
            _const((504, 320)), _const((1, 320)), _const((320, 80)),
            _const((400, 120)), _const((1, 120)),
            _const((120, 84)), _const((1, 84)),
            _const((84, 128)), _const((1, 128)),
        ],
        out_specs=pl.BlockSpec((bb, 128), lambda i: (i, 0)),
        compiler_params=pltpu.CompilerParams(
            dimension_semantics=("parallel",),
            vmem_limit_bytes=32 * 1024 * 1024),
        cost_estimate=cost,
    )(xr, params['w1'], params['b1'], params['q1'],
      params['w2'], params['b2'], params['q2'],
      params['fw1'], params['fb1'], params['fw2'], params['fb2'],
      params['fw3'], params['fb3'])
    return out[:n, :10]


# --------------------------- parameter construction --------------------------

def init_torch_params(key, num_classes=10):
    """Deterministic synthetic parameters in PyTorch layout."""
    ks = jax.random.split(key, 10)

    def dense(k, shape, fan_in):
        return jax.random.normal(k, shape, jnp.float32) / jnp.sqrt(float(fan_in))

    return {
        'conv1_w': dense(ks[0], (6, 1, 5, 5), 25),
        'conv1_b': 0.1 * jax.random.normal(ks[1], (6,), jnp.float32),
        'conv2_w': dense(ks[2], (16, 6, 5, 5), 150),
        'conv2_b': 0.1 * jax.random.normal(ks[3], (16,), jnp.float32),
        'fc1_w': dense(ks[4], (120, 400), 400),
        'fc1_b': 0.1 * jax.random.normal(ks[5], (120,), jnp.float32),
        'fc2_w': dense(ks[6], (84, 120), 120),
        'fc2_b': 0.1 * jax.random.normal(ks[7], (84,), jnp.float32),
        'fc3_w': dense(ks[8], (num_classes, 84), 84),
        'fc3_b': 0.1 * jax.random.normal(ks[9], (num_classes,), jnp.float32),
    }


def pack_params(tp, num_classes=10, pad_to=128):
    """Rearrange PyTorch-layout weights into the kernel's banded-matmul layouts."""
    w1 = np.asarray(tp['conv1_w'], np.float32).reshape(6, 5, 5)   # (co, dh, dw)
    b1 = np.asarray(tp['conv1_b'], np.float32)
    w2 = np.asarray(tp['conv2_w'], np.float32)                    # (co, ci, dh, dw)
    b2 = np.asarray(tp['conv2_b'], np.float32)

    # conv1: LHS col k = j*128 + q*32 + iw  -> input pixel (4*(i7+j)+q, iw)
    #        out col   = t*168 + ow*6 + co  -> output pixel (4*i7+t, ow), ch co
    W1 = np.zeros((256, 672), np.float32)
    for j in range(2):
        for q in range(4):
            for t in range(4):
                dh = 4 * j + q - t
                if 0 <= dh <= 4:
                    for dw in range(5):
                        for ow in range(28):
                            W1[j * 128 + q * 32 + ow + dw,
                               t * 168 + ow * 6: t * 168 + ow * 6 + 6] = w1[:, dh, dw]
    B1 = np.tile(b1, 4 * 28)                                      # (672,)

    # pool1: (t, ow, co) -> (r=t//2, ow14=ow//2, co), x0.25
    Q1 = np.zeros((672, 168), np.float32)
    for t in range(4):
        for ow in range(28):
            for c in range(6):
                Q1[t * 168 + ow * 6 + c, (t // 2) * 84 + (ow // 2) * 6 + c] = 0.25

    # conv2: LHS col = j*168 + r*84 + ow14*6 + ci -> p1 pixel (2*(o5+j)+r, ow14), ch ci
    #        out col = p*160 + ow10*16 + co       -> output pixel (2*o5+p, ow10), ch co
    W2 = np.zeros((504, 320), np.float32)
    for j in range(3):
        for r in range(2):
            for p in range(2):
                dh = 2 * j + r - p
                if 0 <= dh <= 4:
                    for dw in range(5):
                        for ow10 in range(10):
                            ow14 = ow10 + dw
                            for ci in range(6):
                                W2[j * 168 + r * 84 + ow14 * 6 + ci,
                                   p * 160 + ow10 * 16: p * 160 + ow10 * 16 + 16] = \
                                    w2[:, ci, dh, dw]
    B2 = np.tile(b2, 2 * 10)                                      # (320,)

    # pool2: (p, ow10, co) -> (ow5=ow10//2, co), x0.25
    Q2 = np.zeros((320, 80), np.float32)
    for p in range(2):
        for ow10 in range(10):
            for c in range(16):
                Q2[p * 160 + ow10 * 16 + c, (ow10 // 2) * 16 + c] = 0.25

    # fc1: kernel feature index h*80 + w*16 + co  <->  torch co*25 + h*5 + w
    fc1_w = np.asarray(tp['fc1_w'], np.float32)                   # (120, 400)
    FW1 = np.zeros((400, 120), np.float32)
    for co in range(16):
        for h in range(5):
            for w in range(5):
                FW1[h * 80 + w * 16 + co, :] = fc1_w[:, co * 25 + h * 5 + w]

    FW3 = np.zeros((84, pad_to), np.float32)
    FW3[:, :num_classes] = np.asarray(tp['fc3_w'], np.float32).T
    FB3 = np.zeros((1, pad_to), np.float32)
    FB3[0, :num_classes] = np.asarray(tp['fc3_b'], np.float32)

    bf = jnp.bfloat16
    return {
        'w1': jnp.asarray(W1, bf), 'b1': jnp.asarray(B1.reshape(1, -1)),
        'q1': jnp.asarray(Q1, bf),
        'w2': jnp.asarray(W2, bf), 'b2': jnp.asarray(B2.reshape(1, -1)),
        'q2': jnp.asarray(Q2, bf),
        'fw1': jnp.asarray(FW1, bf),
        'fb1': jnp.asarray(np.asarray(tp['fc1_b'], np.float32).reshape(1, -1)),
        'fw2': jnp.asarray(np.asarray(tp['fc2_w'], np.float32).T, bf),
        'fb2': jnp.asarray(np.asarray(tp['fc2_b'], np.float32).reshape(1, -1)),
        'fw3': jnp.asarray(FW3, bf), 'fb3': jnp.asarray(FB3),
    }


# ------------------------------ plain-JAX reference ---------------------------

def lenet5_reference(x_nchw, tp):
    """XLA reference with PyTorch-layout weights (for validation)."""
    def avg_pool_2x2(y):
        return 0.25 * (y[:, :, 0::2, 0::2] + y[:, :, 0::2, 1::2]
                       + y[:, :, 1::2, 0::2] + y[:, :, 1::2, 1::2])

    dn = ('NCHW', 'OIHW', 'NCHW')
    y = lax.conv_general_dilated(x_nchw.astype(jnp.float32), tp['conv1_w'],
                                 (1, 1), 'VALID', dimension_numbers=dn)
    y = avg_pool_2x2(jnp.maximum(y + tp['conv1_b'].reshape(1, -1, 1, 1), 0.0))
    y = lax.conv_general_dilated(y, tp['conv2_w'], (1, 1), 'VALID',
                                 dimension_numbers=dn)
    y = avg_pool_2x2(jnp.maximum(y + tp['conv2_b'].reshape(1, -1, 1, 1), 0.0))
    f = y.reshape(y.shape[0], -1)
    h = jnp.maximum(f @ tp['fc1_w'].T + tp['fc1_b'], 0.0)
    h = jnp.maximum(h @ tp['fc2_w'].T + tp['fc2_b'], 0.0)
    return h @ tp['fc3_w'].T + tp['fc3_b']


# ----------------------------------- main -------------------------------------

if __name__ == "__main__":
    key = jax.random.PRNGKey(0)
    kx, kp = jax.random.split(key)
    # LeNet-5 (fc1 = 16*5*5) implies 1x32x32 inputs: 32->28->14->10->5.
    x = jax.random.normal(kx, (2, 1, 32, 32), jnp.float32)

    torch_params = init_torch_params(kp)
    params = pack_params(torch_params)

    out = jax.jit(lenet5_forward)(x, params)
    out = jax.block_until_ready(out)
    assert out.shape == (2, 10), out.shape

    ref = lenet5_reference(x, torch_params)
    np.testing.assert_allclose(np.asarray(out), np.asarray(ref),
                               rtol=5e-2, atol=5e-2)
    print("KERNEL_OK")
</pallas_src>

<mosaic_0001>
module attributes {stable_mosaic.version = 11 : i64} {
  func.func @_lenet5_kernel(%arg0: i32, %arg1: memref<8x8x128xf32, #tpu.memory_space<vmem>>, %arg2: memref<256x672xbf16, #tpu.memory_space<vmem>>, %arg3: memref<1x672xf32, #tpu.memory_space<vmem>>, %arg4: memref<672x168xbf16, #tpu.memory_space<vmem>>, %arg5: memref<504x320xbf16, #tpu.memory_space<vmem>>, %arg6: memref<1x320xf32, #tpu.memory_space<vmem>>, %arg7: memref<320x80xbf16, #tpu.memory_space<vmem>>, %arg8: memref<400x120xbf16, #tpu.memory_space<vmem>>, %arg9: memref<1x120xf32, #tpu.memory_space<vmem>>, %arg10: memref<120x84xbf16, #tpu.memory_space<vmem>>, %arg11: memref<1x84xf32, #tpu.memory_space<vmem>>, %arg12: memref<84x128xbf16, #tpu.memory_space<vmem>>, %arg13: memref<1x128xf32, #tpu.memory_space<vmem>>, %arg14: memref<8x128xf32, #tpu.memory_space<vmem>>) attributes {dimension_semantics = [#tpu.dimension_semantics<parallel>], iteration_bounds = array<i64: 1>, scalar_prefetch = 0 : i64, scratch_operands = 0 : i64, tpu.core_type = #tpu.core_type<tc>, window_params = [{transform_indices = @transform_0, window_bounds = array<i64: 8, 8, 128>}, {pipeline_mode = #tpu.pipeline_mode<synchronous>, transform_indices = @transform_1, window_bounds = array<i64: 256, 672>}, {pipeline_mode = #tpu.pipeline_mode<synchronous>, transform_indices = @transform_2, window_bounds = array<i64: 1, 672>}, {pipeline_mode = #tpu.pipeline_mode<synchronous>, transform_indices = @transform_3, window_bounds = array<i64: 672, 168>}, {pipeline_mode = #tpu.pipeline_mode<synchronous>, transform_indices = @transform_4, window_bounds = array<i64: 504, 320>}, {pipeline_mode = #tpu.pipeline_mode<synchronous>, transform_indices = @transform_5, window_bounds = array<i64: 1, 320>}, {pipeline_mode = #tpu.pipeline_mode<synchronous>, transform_indices = @transform_6, window_bounds = array<i64: 320, 80>}, {pipeline_mode = #tpu.pipeline_mode<synchronous>, transform_indices = @transform_7, window_bounds = array<i64: 400, 120>}, {pipeline_mode = #tpu.pipeline_mode<synchronous>, transform_indices = @transform_8, window_bounds = array<i64: 1, 120>}, {pipeline_mode = #tpu.pipeline_mode<synchronous>, transform_indices = @transform_9, window_bounds = array<i64: 120, 84>}, {pipeline_mode = #tpu.pipeline_mode<synchronous>, transform_indices = @transform_10, window_bounds = array<i64: 1, 84>}, {pipeline_mode = #tpu.pipeline_mode<synchronous>, transform_indices = @transform_11, window_bounds = array<i64: 84, 128>}, {pipeline_mode = #tpu.pipeline_mode<synchronous>, transform_indices = @transform_12, window_bounds = array<i64: 1, 128>}, {transform_indices = @transform_13, window_bounds = array<i64: 8, 128>}]} {
    %c0 = arith.constant 0 : index
    %c0_0 = arith.constant 0 : index
    %c0_1 = arith.constant 0 : index
    %0 = vector.load %arg1[%c0, %c0_0, %c0_1] : memref<8x8x128xf32, #tpu.memory_space<vmem>>, vector<1x8x128xf32>
    %1 = vector.shape_cast %0 : vector<1x8x128xf32> to vector<8x128xf32>
    %2 = arith.truncf %1 : vector<8x128xf32> to vector<8x128xbf16>
    %c1 = arith.constant 1 : index
    %c0_2 = arith.constant 0 : index
    %c0_3 = arith.constant 0 : index
    %3 = vector.load %arg1[%c1, %c0_2, %c0_3] : memref<8x8x128xf32, #tpu.memory_space<vmem>>, vector<1x8x128xf32>
    %4 = vector.shape_cast %3 : vector<1x8x128xf32> to vector<8x128xf32>
    %5 = arith.truncf %4 : vector<8x128xf32> to vector<8x128xbf16>
    %c2 = arith.constant 2 : index
    %c0_4 = arith.constant 0 : index
    %c0_5 = arith.constant 0 : index
    %6 = vector.load %arg1[%c2, %c0_4, %c0_5] : memref<8x8x128xf32, #tpu.memory_space<vmem>>, vector<1x8x128xf32>
    %7 = vector.shape_cast %6 : vector<1x8x128xf32> to vector<8x128xf32>
    %8 = arith.truncf %7 : vector<8x128xf32> to vector<8x128xbf16>
    %c3 = arith.constant 3 : index
    %c0_6 = arith.constant 0 : index
    %c0_7 = arith.constant 0 : index
    %9 = vector.load %arg1[%c3, %c0_6, %c0_7] : memref<8x8x128xf32, #tpu.memory_space<vmem>>, vector<1x8x128xf32>
    %10 = vector.shape_cast %9 : vector<1x8x128xf32> to vector<8x128xf32>
    %11 = arith.truncf %10 : vector<8x128xf32> to vector<8x128xbf16>
    %c4 = arith.constant 4 : index
    %c0_8 = arith.constant 0 : index
    %c0_9 = arith.constant 0 : index
    %12 = vector.load %arg1[%c4, %c0_8, %c0_9] : memref<8x8x128xf32, #tpu.memory_space<vmem>>, vector<1x8x128xf32>
    %13 = vector.shape_cast %12 : vector<1x8x128xf32> to vector<8x128xf32>
    %14 = arith.truncf %13 : vector<8x128xf32> to vector<8x128xbf16>
    %c5 = arith.constant 5 : index
    %c0_10 = arith.constant 0 : index
    %c0_11 = arith.constant 0 : index
    %15 = vector.load %arg1[%c5, %c0_10, %c0_11] : memref<8x8x128xf32, #tpu.memory_space<vmem>>, vector<1x8x128xf32>
    %16 = vector.shape_cast %15 : vector<1x8x128xf32> to vector<8x128xf32>
    %17 = arith.truncf %16 : vector<8x128xf32> to vector<8x128xbf16>
    %c6 = arith.constant 6 : index
    %c0_12 = arith.constant 0 : index
    %c0_13 = arith.constant 0 : index
    %18 = vector.load %arg1[%c6, %c0_12, %c0_13] : memref<8x8x128xf32, #tpu.memory_space<vmem>>, vector<1x8x128xf32>
    %19 = vector.shape_cast %18 : vector<1x8x128xf32> to vector<8x128xf32>
    %20 = arith.truncf %19 : vector<8x128xf32> to vector<8x128xbf16>
    %c7 = arith.constant 7 : index
    %c0_14 = arith.constant 0 : index
    %c0_15 = arith.constant 0 : index
    %21 = vector.load %arg1[%c7, %c0_14, %c0_15] : memref<8x8x128xf32, #tpu.memory_space<vmem>>, vector<1x8x128xf32>
    %22 = vector.shape_cast %21 : vector<1x8x128xf32> to vector<8x128xf32>
    %23 = arith.truncf %22 : vector<8x128xf32> to vector<8x128xbf16>
    %24 = tpu.concatenate %2, %5 in 1 : vector<8x128xbf16>, vector<8x128xbf16> -> vector<8x256xbf16>
    %25 = tpu.concatenate %5, %8 in 1 : vector<8x128xbf16>, vector<8x128xbf16> -> vector<8x256xbf16>
    %26 = tpu.concatenate %8, %11 in 1 : vector<8x128xbf16>, vector<8x128xbf16> -> vector<8x256xbf16>
    %27 = tpu.concatenate %11, %14 in 1 : vector<8x128xbf16>, vector<8x128xbf16> -> vector<8x256xbf16>
    %28 = tpu.concatenate %14, %17 in 1 : vector<8x128xbf16>, vector<8x128xbf16> -> vector<8x256xbf16>
    %29 = tpu.concatenate %17, %20 in 1 : vector<8x128xbf16>, vector<8x128xbf16> -> vector<8x256xbf16>
    %30 = tpu.concatenate %20, %23 in 1 : vector<8x128xbf16>, vector<8x128xbf16> -> vector<8x256xbf16>
    %31 = tpu.concatenate %24, %25, %26, %27, %28, %29, %30 in 0 : vector<8x256xbf16>, vector<8x256xbf16>, vector<8x256xbf16>, vector<8x256xbf16>, vector<8x256xbf16>, vector<8x256xbf16>, vector<8x256xbf16> -> vector<56x256xbf16>
    %c0_16 = arith.constant 0 : index
    %c0_17 = arith.constant 0 : index
    %32 = vector.load %arg2[%c0_16, %c0_17] : memref<256x672xbf16, #tpu.memory_space<vmem>>, vector<256x672xbf16>
    %cst = arith.constant dense<0.000000e+00> : vector<56x672xf32>
    %33 = tpu.matmul %31, %32, %cst {dimension_numbers = #tpu.dot_dimension_numbers<[1], [0], [0], [1], [0, 0, 1, 1], [], []>} : vector<56x256xbf16>, vector<256x672xbf16>, vector<56x672xf32> -> vector<56x672xf32>
    %c0_18 = arith.constant 0 : index
    %c0_19 = arith.constant 0 : index
    %34 = vector.load %arg3[%c0_18, %c0_19] : memref<1x672xf32, #tpu.memory_space<vmem>>, vector<1x672xf32>
    %35 = vector.broadcast %34 : vector<1x672xf32> to vector<56x672xf32>
    %36 = arith.addf %33, %35 : vector<56x672xf32>
    %cst_20 = arith.constant 0.000000e+00 : f32
    %37 = vector.broadcast %cst_20 : f32 to vector<56x672xf32>
    %38 = arith.maximumf %36, %37 : vector<56x672xf32>
    %39 = arith.truncf %38 : vector<56x672xf32> to vector<56x672xbf16>
    %c0_21 = arith.constant 0 : index
    %c0_22 = arith.constant 0 : index
    %40 = vector.load %arg4[%c0_21, %c0_22] : memref<672x168xbf16, #tpu.memory_space<vmem>>, vector<672x168xbf16>
    %cst_23 = arith.constant dense<0.000000e+00> : vector<56x168xf32>
    %41 = tpu.matmul %39, %40, %cst_23 {dimension_numbers = #tpu.dot_dimension_numbers<[1], [0], [0], [1], [0, 0, 1, 1], [], []>} : vector<56x672xbf16>, vector<672x168xbf16>, vector<56x168xf32> -> vector<56x168xf32>
    %42 = arith.truncf %41 : vector<56x168xf32> to vector<56x168xbf16>
    %43 = vector.extract_strided_slice %42 {offsets = [0, 0], sizes = [8, 168], strides = [1, 1]} : vector<56x168xbf16> to vector<8x168xbf16>
    %44 = vector.extract_strided_slice %42 {offsets = [8, 0], sizes = [8, 168], strides = [1, 1]} : vector<56x168xbf16> to vector<8x168xbf16>
    %45 = vector.extract_strided_slice %42 {offsets = [16, 0], sizes = [8, 168], strides = [1, 1]} : vector<56x168xbf16> to vector<8x168xbf16>
    %46 = tpu.concatenate %43, %44, %45 in 1 : vector<8x168xbf16>, vector<8x168xbf16>, vector<8x168xbf16> -> vector<8x504xbf16>
    %47 = vector.extract_strided_slice %42 {offsets = [8, 0], sizes = [8, 168], strides = [1, 1]} : vector<56x168xbf16> to vector<8x168xbf16>
    %48 = vector.extract_strided_slice %42 {offsets = [16, 0], sizes = [8, 168], strides = [1, 1]} : vector<56x168xbf16> to vector<8x168xbf16>
    %49 = vector.extract_strided_slice %42 {offsets = [24, 0], sizes = [8, 168], strides = [1, 1]} : vector<56x168xbf16> to vector<8x168xbf16>
    %50 = tpu.concatenate %47, %48, %49 in 1 : vector<8x168xbf16>, vector<8x168xbf16>, vector<8x168xbf16> -> vector<8x504xbf16>
    %51 = vector.extract_strided_slice %42 {offsets = [16, 0], sizes = [8, 168], strides = [1, 1]} : vector<56x168xbf16> to vector<8x168xbf16>
    %52 = vector.extract_strided_slice %42 {offsets = [24, 0], sizes = [8, 168], strides = [1, 1]} : vector<56x168xbf16> to vector<8x168xbf16>
    %53 = vector.extract_strided_slice %42 {offsets = [32, 0], sizes = [8, 168], strides = [1, 1]} : vector<56x168xbf16> to vector<8x168xbf16>
    %54 = tpu.concatenate %51, %52, %53 in 1 : vector<8x168xbf16>, vector<8x168xbf16>, vector<8x168xbf16> -> vector<8x504xbf16>
    %55 = vector.extract_strided_slice %42 {offsets = [24, 0], sizes = [8, 168], strides = [1, 1]} : vector<56x168xbf16> to vector<8x168xbf16>
    %56 = vector.extract_strided_slice %42 {offsets = [32, 0], sizes = [8, 168], strides = [1, 1]} : vector<56x168xbf16> to vector<8x168xbf16>
    %57 = vector.extract_strided_slice %42 {offsets = [40, 0], sizes = [8, 168], strides = [1, 1]} : vector<56x168xbf16> to vector<8x168xbf16>
    %58 = tpu.concatenate %55, %56, %57 in 1 : vector<8x168xbf16>, vector<8x168xbf16>, vector<8x168xbf16> -> vector<8x504xbf16>
    %59 = vector.extract_strided_slice %42 {offsets = [32, 0], sizes = [8, 168], strides = [1, 1]} : vector<56x168xbf16> to vector<8x168xbf16>
    %60 = vector.extract_strided_slice %42 {offsets = [40, 0], sizes = [8, 168], strides = [1, 1]} : vector<56x168xbf16> to vector<8x168xbf16>
    %61 = vector.extract_strided_slice %42 {offsets = [48, 0], sizes = [8, 168], strides = [1, 1]} : vector<56x168xbf16> to vector<8x168xbf16>
    %62 = tpu.concatenate %59, %60, %61 in 1 : vector<8x168xbf16>, vector<8x168xbf16>, vector<8x168xbf16> -> vector<8x504xbf16>
    %63 = tpu.concatenate %46, %50, %54, %58, %62 in 0 : vector<8x504xbf16>, vector<8x504xbf16>, vector<8x504xbf16>, vector<8x504xbf16>, vector<8x504xbf16> -> vector<40x504xbf16>
    %c0_24 = arith.constant 0 : index
    %c0_25 = arith.constant 0 : index
    %64 = vector.load %arg5[%c0_24, %c0_25] : memref<504x320xbf16, #tpu.memory_space<vmem>>, vector<504x320xbf16>
    %cst_26 = arith.constant dense<0.000000e+00> : vector<40x320xf32>
    %65 = tpu.matmul %63, %64, %cst_26 {dimension_numbers = #tpu.dot_dimension_numbers<[1], [0], [0], [1], [0, 0, 1, 1], [], []>} : vector<40x504xbf16>, vector<504x320xbf16>, vector<40x320xf32> -> vector<40x320xf32>
    %c0_27 = arith.constant 0 : index
    %c0_28 = arith.constant 0 : index
    %66 = vector.load %arg6[%c0_27, %c0_28] : memref<1x320xf32, #tpu.memory_space<vmem>>, vector<1x320xf32>
    %67 = vector.broadcast %66 : vector<1x320xf32> to vector<40x320xf32>
    %68 = arith.addf %65, %67 : vector<40x320xf32>
    %cst_29 = arith.constant 0.000000e+00 : f32
    %69 = vector.broadcast %cst_29 : f32 to vector<40x320xf32>
    %70 = arith.maximumf %68, %69 : vector<40x320xf32>
    %71 = arith.truncf %70 : vector<40x320xf32> to vector<40x320xbf16>
    %c0_30 = arith.constant 0 : index
    %c0_31 = arith.constant 0 : index
    %72 = vector.load %arg7[%c0_30, %c0_31] : memref<320x80xbf16, #tpu.memory_space<vmem>>, vector<320x80xbf16>
    %cst_32 = arith.constant dense<0.000000e+00> : vector<40x80xf32>
    %73 = tpu.matmul %71, %72, %cst_32 {dimension_numbers = #tpu.dot_dimension_numbers<[1], [0], [0], [1], [0, 0, 1, 1], [], []>} : vector<40x320xbf16>, vector<320x80xbf16>, vector<40x80xf32> -> vector<40x80xf32>
    %74 = arith.truncf %73 : vector<40x80xf32> to vector<40x80xbf16>
    %75 = vector.extract_strided_slice %74 {offsets = [0, 0], sizes = [8, 80], strides = [1, 1]} : vector<40x80xbf16> to vector<8x80xbf16>
    %76 = vector.extract_strided_slice %74 {offsets = [8, 0], sizes = [8, 80], strides = [1, 1]} : vector<40x80xbf16> to vector<8x80xbf16>
    %77 = vector.extract_strided_slice %74 {offsets = [16, 0], sizes = [8, 80], strides = [1, 1]} : vector<40x80xbf16> to vector<8x80xbf16>
    %78 = vector.extract_strided_slice %74 {offsets = [24, 0], sizes = [8, 80], strides = [1, 1]} : vector<40x80xbf16> to vector<8x80xbf16>
    %79 = vector.extract_strided_slice %74 {offsets = [32, 0], sizes = [8, 80], strides = [1, 1]} : vector<40x80xbf16> to vector<8x80xbf16>
    %80 = tpu.concatenate %75, %76, %77, %78, %79 in 1 : vector<8x80xbf16>, vector<8x80xbf16>, vector<8x80xbf16>, vector<8x80xbf16>, vector<8x80xbf16> -> vector<8x400xbf16>
    %c0_33 = arith.constant 0 : index
    %c0_34 = arith.constant 0 : index
    %81 = vector.load %arg8[%c0_33, %c0_34] : memref<400x120xbf16, #tpu.memory_space<vmem>>, vector<400x120xbf16>
    %cst_35 = arith.constant dense<0.000000e+00> : vector<8x120xf32>
    %82 = tpu.matmul %80, %81, %cst_35 {dimension_numbers = #tpu.dot_dimension_numbers<[1], [0], [0], [1], [0, 0, 1, 1], [], []>} : vector<8x400xbf16>, vector<400x120xbf16>, vector<8x120xf32> -> vector<8x120xf32>
    %c0_36 = arith.constant 0 : index
    %c0_37 = arith.constant 0 : index
    %83 = vector.load %arg9[%c0_36, %c0_37] : memref<1x120xf32, #tpu.memory_space<vmem>>, vector<1x120xf32>
    %84 = vector.broadcast %83 : vector<1x120xf32> to vector<8x120xf32>
    %85 = arith.addf %82, %84 : vector<8x120xf32>
    %cst_38 = arith.constant 0.000000e+00 : f32
    %86 = vector.broadcast %cst_38 : f32 to vector<8x120xf32>
    %87 = arith.maximumf %85, %86 : vector<8x120xf32>
    %88 = arith.truncf %87 : vector<8x120xf32> to vector<8x120xbf16>
    %c0_39 = arith.constant 0 : index
    %c0_40 = arith.constant 0 : index
    %89 = vector.load %arg10[%c0_39, %c0_40] : memref<120x84xbf16, #tpu.memory_space<vmem>>, vector<120x84xbf16>
    %cst_41 = arith.constant dense<0.000000e+00> : vector<8x84xf32>
    %90 = tpu.matmul %88, %89, %cst_41 {dimension_numbers = #tpu.dot_dimension_numbers<[1], [0], [0], [1], [0, 0, 1, 1], [], []>} : vector<8x120xbf16>, vector<120x84xbf16>, vector<8x84xf32> -> vector<8x84xf32>
    %c0_42 = arith.constant 0 : index
    %c0_43 = arith.constant 0 : index
    %91 = vector.load %arg11[%c0_42, %c0_43] : memref<1x84xf32, #tpu.memory_space<vmem>>, vector<1x84xf32>
    %92 = vector.broadcast %91 : vector<1x84xf32> to vector<8x84xf32>
    %93 = arith.addf %90, %92 : vector<8x84xf32>
    %cst_44 = arith.constant 0.000000e+00 : f32
    %94 = vector.broadcast %cst_44 : f32 to vector<8x84xf32>
    %95 = arith.maximumf %93, %94 : vector<8x84xf32>
    %96 = arith.truncf %95 : vector<8x84xf32> to vector<8x84xbf16>
    %c0_45 = arith.constant 0 : index
    %c0_46 = arith.constant 0 : index
    %97 = vector.load %arg12[%c0_45, %c0_46] : memref<84x128xbf16, #tpu.memory_space<vmem>>, vector<84x128xbf16>
    %cst_47 = arith.constant dense<0.000000e+00> : vector<8x128xf32>
    %98 = tpu.matmul %96, %97, %cst_47 {dimension_numbers = #tpu.dot_dimension_numbers<[1], [0], [0], [1], [0, 0, 1, 1], [], []>} : vector<8x84xbf16>, vector<84x128xbf16>, vector<8x128xf32> -> vector<8x128xf32>
    %c0_48 = arith.constant 0 : index
    %c0_49 = arith.constant 0 : index
    %99 = vector.load %arg13[%c0_48, %c0_49] : memref<1x128xf32, #tpu.memory_space<vmem>>, vector<1x128xf32>
    %100 = vector.broadcast %99 : vector<1x128xf32> to vector<8x128xf32>
    %101 = arith.addf %98, %100 : vector<8x128xf32>
    %c0_50 = arith.constant 0 : index
    %c0_51 = arith.constant 0 : index
    %102 = vector.load %arg14[%c0_50, %c0_51] : memref<8x128xf32, #tpu.memory_space<vmem>>, vector<8x128xf32>
    tpu.vector_store %arg14[%c0_50, %c0_51], %101 {strides = array<i32>} : memref<8x128xf32, #tpu.memory_space<vmem>>, vector<8x128xf32>,
    return
  }
  func.func @transform_0(%arg0: i32) -> (i32, i32, i32) {
    %c0_i32 = arith.constant 0 : i32
    %c0_i32_0 = arith.constant 0 : i32
    %c0_i32_1 = arith.constant 0 : i32
    return %c0_i32, %arg0, %c0_i32_0 : i32, i32, i32
  }
  func.func @transform_1(%arg0: i32) -> (i32, i32) {
    %c0_i32 = arith.constant 0 : i32
    %c0_i32_0 = arith.constant 0 : i32
    %c0_i32_1 = arith.constant 0 : i32
    return %c0_i32, %c0_i32_0 : i32, i32
  }
  func.func @transform_2(%arg0: i32) -> (i32, i32) {
    %c0_i32 = arith.constant 0 : i32
    %c0_i32_0 = arith.constant 0 : i32
    %c0_i32_1 = arith.constant 0 : i32
    return %c0_i32, %c0_i32_0 : i32, i32
  }
  func.func @transform_3(%arg0: i32) -> (i32, i32) {
    %c0_i32 = arith.constant 0 : i32
    %c0_i32_0 = arith.constant 0 : i32
    %c0_i32_1 = arith.constant 0 : i32
    return %c0_i32, %c0_i32_0 : i32, i32
  }
  func.func @transform_4(%arg0: i32) -> (i32, i32) {
    %c0_i32 = arith.constant 0 : i32
    %c0_i32_0 = arith.constant 0 : i32
    %c0_i32_1 = arith.constant 0 : i32
    return %c0_i32, %c0_i32_0 : i32, i32
  }
  func.func @transform_5(%arg0: i32) -> (i32, i32) {
    %c0_i32 = arith.constant 0 : i32
    %c0_i32_0 = arith.constant 0 : i32
    %c0_i32_1 = arith.constant 0 : i32
    return %c0_i32, %c0_i32_0 : i32, i32
  }
  func.func @transform_6(%arg0: i32) -> (i32, i32) {
    %c0_i32 = arith.constant 0 : i32
    %c0_i32_0 = arith.constant 0 : i32
    %c0_i32_1 = arith.constant 0 : i32
    return %c0_i32, %c0_i32_0 : i32, i32
  }
  func.func @transform_7(%arg0: i32) -> (i32, i32) {
    %c0_i32 = arith.constant 0 : i32
    %c0_i32_0 = arith.constant 0 : i32
    %c0_i32_1 = arith.constant 0 : i32
    return %c0_i32, %c0_i32_0 : i32, i32
  }
  func.func @transform_8(%arg0: i32) -> (i32, i32) {
    %c0_i32 = arith.constant 0 : i32
    %c0_i32_0 = arith.constant 0 : i32
    %c0_i32_1 = arith.constant 0 : i32
    return %c0_i32, %c0_i32_0 : i32, i32
  }
  func.func @transform_9(%arg0: i32) -> (i32, i32) {
    %c0_i32 = arith.constant 0 : i32
    %c0_i32_0 = arith.constant 0 : i32
    %c0_i32_1 = arith.constant 0 : i32
    return %c0_i32, %c0_i32_0 : i32, i32
  }
  func.func @transform_10(%arg0: i32) -> (i32, i32) {
    %c0_i32 = arith.constant 0 : i32
    %c0_i32_0 = arith.constant 0 : i32
    %c0_i32_1 = arith.constant 0 : i32
    return %c0_i32, %c0_i32_0 : i32, i32
  }
  func.func @transform_11(%arg0: i32) -> (i32, i32) {
    %c0_i32 = arith.constant 0 : i32
    %c0_i32_0 = arith.constant 0 : i32
    %c0_i32_1 = arith.constant 0 : i32
    return %c0_i32, %c0_i32_0 : i32, i32
  }
  func.func @transform_12(%arg0: i32) -> (i32, i32) {
    %c0_i32 = arith.constant 0 : i32
    %c0_i32_0 = arith.constant 0 : i32
    %c0_i32_1 = arith.constant 0 : i32
    return %c0_i32, %c0_i32_0 : i32, i32
  }
  func.func @transform_13(%arg0: i32) -> (i32, i32) {
    %c0_i32 = arith.constant 0 : i32
    %c0_i32_0 = arith.constant 0 : i32
    return %arg0, %c0_i32 : i32, i32
  }
}

</mosaic_0001>

<bundles_post_ra>
// kernel: lenet5_forward.1
= control target key start
LH: loop header
LB: loop body
LE: loop exit
PB: predicated region body
PF: predicated region fallthrough
CT: control target
= control target key end

     0   :  { %vm80_vm0 = vcmask 1043456   ;;  %vm1496_vm1 = vcmask 261120   ;;  %s4590_s28 = smov 40   ;;  %s4591_s30 = smov 80   ;;  %vm1738_vm2 = vcmask 326656   ;;  %vm1746_vm3 = vcmask 654336   ;;  %s6048_s1 = inlined_call_operand.vmem [shape: bf16[256,672], index: 1, kind: input, shape index: {}]   ;;  %s6049_s0 = inlined_call_operand.vmem [shape: f32[8,8,128], index: 0, kind: input, shape index: {}]   ;;  %s6050_s3 = inlined_call_operand.vmem [shape: bf16[672,168], index: 3, kind: input, shape index: {}]   ;;  %s6051_s2 = inlined_call_operand.vmem [shape: f32[1,672], index: 2, kind: input, shape index: {}]   ;;  %s6052_s4 = inlined_call_operand.vmem [shape: bf16[504,320], index: 4, kind: input, shape index: {}]   ;;  %s6053_s6 = inlined_call_operand.vmem [shape: bf16[320,80], index: 6, kind: input, shape index: {}]   ;;  %s6054_s5 = inlined_call_operand.vmem [shape: f32[1,320], index: 5, kind: input, shape index: {}]   ;;  %s6055_s7 = inlined_call_operand.vmem [shape: bf16[400,120], index: 7, kind: input, shape index: {}]   ;;  %s6056_s9 = inlined_call_operand.vmem [shape: bf16[120,84], index: 9, kind: input, shape index: {}]   ;;  %s6057_s11 = inlined_call_operand.vmem [shape: bf16[84,128], index: 11, kind: input, shape index: {}]   ;;  %s6058_s8 = inlined_call_operand.vmem [shape: f32[1,120], index: 8, kind: input, shape index: {}]   ;;  %s6059_s10 = inlined_call_operand.vmem [shape: f32[1,84], index: 10, kind: input, shape index: {}]   ;;  %s6060_s12 = inlined_call_operand.vmem [shape: f32[1,128], index: 12, kind: input, shape index: {}]   ;;  %s6061_s13 = inlined_call_operand.vmem [shape: f32[8,128], index: 13, kind: output, shape index: {}]  }
   0x1   :  { %v4134_v0 = vld [vmem:[%s6048_s1 + $0x154] ss:$24 sps:$4 sm:$0xff]   ;;  %v4138_v2 = vld [vmem:[%s6048_s1 + $0x150] ss:$24 sps:$4 sm:$0xff]   ;;  %v4140_v4 = vld [vmem:[%s6048_s1 + $0x124] ss:$24 sps:$4 sm:$0xff]  }
   0x2   :  { %v4136_v1 = vld [vmem:[%s6048_s1 + $0x15c] ss:$24 sps:$4 sm:$0xff]   ;;  %713 = vmatprep.subr.bf16.mxu0 %v4134_v0  ;;  %v4139_v3 = vld [vmem:[%s6048_s1 + $0x158] ss:$24 sps:$4 sm:$0xff]   ;;  %v4142_v5 = vld [vmem:[%s6048_s1 + $0x12c] ss:$24 sps:$4 sm:$0xff]  }
   0x3   :  { %784 = vmatprep.subr.bf16.mxu1 %v4136_v1  ;;  %714 = vmatpush1.bf16.msra.mxu0 %v4138_v2  ;;  %v4144_v6 = vld [vmem:[%s6048_s1 + $0x120] ss:$24 sps:$4 sm:$0xff]   ;;  %v4146_v8 = vld [vmem:[%s6048_s1 + $0xf4] ss:$24 sps:$4 sm:$0xff]   ;;  %v4150_v10 = vld [vmem:[%s6048_s1 + $0xf0] ss:$24 sps:$4 sm:$0xff]  }
   0x4   :  { %785 = vmatpush1.bf16.msra.mxu1 %v4139_v3  ;;  %715 = vmatprep.subr.bf16.mxu0 %v4140_v4  ;;  %v4145_v7 = vld [vmem:[%s6048_s1 + $0x128] ss:$24 sps:$4 sm:$0xff]   ;;  %v4148_v9 = vld [vmem:[%s6048_s1 + $0xfc] ss:$24 sps:$4 sm:$0xff]   ;;  %v4151_v11 = vld [vmem:[%s6048_s1 + $0xf8] ss:$24 sps:$4 sm:$0xff]  }
   0x5   :  { %786 = vmatprep.subr.bf16.mxu1 %v4142_v5  ;;  %v4152_v12 = vld [vmem:[%s6048_s1 + $0xc4] ss:$24 sps:$4 sm:$0xff]   ;;  %v4156_v14 = vld [vmem:[%s6048_s1 + $0xc0] ss:$24 sps:$4 sm:$0xff]   ;;  %v4158_v16 = vld [vmem:[%s6048_s1 + $0x94] ss:$24 sps:$4 sm:$0xff]  }
   0x6   :  { %v4154_v13 = vld [vmem:[%s6048_s1 + $0xcc] ss:$24 sps:$4 sm:$0xff]   ;;  %v4157_v15 = vld [vmem:[%s6048_s1 + $0xc8] ss:$24 sps:$4 sm:$0xff]   ;;  %v4160_v17 = vld [vmem:[%s6048_s1 + $0x9c] ss:$24 sps:$4 sm:$0xff]  }
   0x7   :  { %716 = vmatpush1.bf16.msra.mxu0 %v4144_v6  ;;  %v4162_v18 = vld [vmem:[%s6048_s1 + $0x90] ss:$24 sps:$4 sm:$0xff]   ;;  %v4164_v20 = vld [vmem:[%s6048_s1 + $0x64] ss:$24 sps:$4 sm:$0xff]   ;;  %v4168_v22 = vld [vmem:[%s6048_s1 + $0x60] ss:$24 sps:$4 sm:$0xff]  }
   0x8   :  { %787 = vmatpush1.bf16.msra.mxu1 %v4145_v7  ;;  %717 = vmatprep.subr.bf16.mxu0 %v4146_v8  ;;  %v4163_v19 = vld [vmem:[%s6048_s1 + $0x98] ss:$24 sps:$4 sm:$0xff]   ;;  %v4166_v21 = vld [vmem:[%s6048_s1 + $0x6c] ss:$24 sps:$4 sm:$0xff]   ;;  %v4169_v23 = vld [vmem:[%s6048_s1 + $0x68] ss:$24 sps:$4 sm:$0xff]  }
   0x9   :  { %788 = vmatprep.subr.bf16.mxu1 %v4148_v9  ;;  %v4170_v24 = vld [vmem:[%s6048_s1 + $0x34] ss:$24 sps:$4 sm:$0xff]   ;;  %v4174_v26 = vld [vmem:[%s6048_s1 + $0x30] ss:$24 sps:$4 sm:$0xff]   ;;  %v4176_v28 = vld [vmem:[%s6048_s1 + $0x4] ss:$24 sps:$4 sm:$0xff]  }
   0xa   :  { %v4172_v25 = vld [vmem:[%s6048_s1 + $0x3c] ss:$24 sps:$4 sm:$0xff]   ;;  %v4175_v27 = vld [vmem:[%s6048_s1 + $0x38] ss:$24 sps:$4 sm:$0xff]   ;;  %v4178_v29 = vld [vmem:[%s6048_s1 + $0xc] ss:$24 sps:$4 sm:$0xff]  }
   0xb   :  { %718 = vmatpush1.bf16.msra.mxu0 %v4150_v10  ;;  %v4180_v30 = vld [vmem:[%s6048_s1] ss:$24 sps:$4 sm:$0xff]   ;;  %v4182_v32 = vld [vmem:[%s6048_s1 + $0x2d4] ss:$24 sps:$4 sm:$0xff]   ;;  %v4186_v34 = vld [vmem:[%s6048_s1 + $0x2d0] ss:$24 sps:$4 sm:$0xff]  }
   0xc   :  { %789 = vmatpush1.bf16.msra.mxu1 %v4151_v11  ;;  %719 = vmatprep.subr.bf16.mxu0 %v4152_v12  ;;  %v4181_v31 = vld [vmem:[%s6048_s1 + $0x8] ss:$24 sps:$4 sm:$0xff]   ;;  %v4184_v33 = vld [vmem:[%s6048_s1 + $0x2dc] ss:$24 sps:$4 sm:$0xff]   ;;  %v4187_v35 = vld [vmem:[%s6048_s1 + $0x2d8] ss:$24 sps:$4 sm:$0xff]  }
   0xd   :  { %790 = vmatprep.subr.bf16.mxu1 %v4154_v13  ;;  %v4188_v36 = vld [vmem:[%s6048_s1 + $0x2a4] ss:$24 sps:$4 sm:$0xff]   ;;  %v4192_v38 = vld [vmem:[%s6048_s1 + $0x2a0] ss:$24 sps:$4 sm:$0xff]   ;;  %v4194_v40 = vld [vmem:[%s6048_s1 + $0x274] ss:$24 sps:$4 sm:$0xff]  }
   0xe   :  { %v4190_v37 = vld [vmem:[%s6048_s1 + $0x2ac] ss:$24 sps:$4 sm:$0xff]   ;;  %v4193_v39 = vld [vmem:[%s6048_s1 + $0x2a8] ss:$24 sps:$4 sm:$0xff]   ;;  %v4196_v41 = vld [vmem:[%s6048_s1 + $0x27c] ss:$24 sps:$4 sm:$0xff]  }
   0xf   :  { %720 = vmatpush1.bf16.msra.mxu0 %v4156_v14  ;;  %v4198_v42 = vld [vmem:[%s6048_s1 + $0x270] ss:$24 sps:$4 sm:$0xff]   ;;  %v4200_v44 = vld [vmem:[%s6048_s1 + $0x244] ss:$24 sps:$4 sm:$0xff]   ;;  %v4204_v47 = vld [vmem:[%s6048_s1 + $0x240] ss:$24 sps:$4 sm:$0xff]  }
  0x10   :  { %791 = vmatpush1.bf16.msra.mxu1 %v4157_v15  ;;  %721 = vmatprep.subr.bf16.mxu0 %v4158_v16  ;;  %v4199_v43 = vld [vmem:[%s6048_s1 + $0x278] ss:$24 sps:$4 sm:$0xff]   ;;  %v4202_v45 = vld [vmem:[%s6048_s1 + $0x24c] ss:$24 sps:$4 sm:$0xff]   ;;  %v4205_v49 = vld [vmem:[%s6048_s1 + $0x248] ss:$24 sps:$4 sm:$0xff]  }
  0x11   :  { %792 = vmatprep.subr.bf16.mxu1 %v4160_v17  ;;  %v3560_v46 = vld [vmem:[%s6049_s0 + $0x8] sm:$0xff]  ;;  %v3561_v48 = vld [vmem:[%s6049_s0 + $0x10] sm:$0xff]  ;;  %v4212_v57 = vld [vmem:[%s6048_s1 + $0x1e4] ss:$24 sps:$4 sm:$0xff]   ;;  %vm2463_vm4 = vcmask 982016   ;;  %vm4593_vm5 = vmmov 0  }
  0x12   :  { %v4206_v50 = vld [vmem:[%s6048_s1 + $0x214] ss:$24 sps:$4 sm:$0xff]   ;;  %v49_v51 = vpack.c.bf16 %v3560_v46, %v3560_v46  ;;  %v4821_v52 = vpack.c.bf16 %v3561_v48, %v3561_v48  ;;  %v4210_v55 = vld [vmem:[%s6048_s1 + $0x210] ss:$24 sps:$4 sm:$0xff]   ;;  %v4216_v60 = vld [vmem:[%s6048_s1 + $0x1e0] ss:$24 sps:$4 sm:$0xff]  }
  0x13   :  { %722 = vmatpush1.bf16.msra.mxu0 %v4162_v18  ;;  %v4208_v53 = vld [vmem:[%s6048_s1 + $0x21c] ss:$24 sps:$4 sm:$0xff]   ;;  %v4211_v56 = vld [vmem:[%s6048_s1 + $0x218] ss:$24 sps:$4 sm:$0xff]   ;;  %v4214_v59 = vld [vmem:[%s6048_s1 + $0x1ec] ss:$24 sps:$4 sm:$0xff]  }
  0x14   :  { %793 = vmatpush1.bf16.msra.mxu1 %v4163_v19  ;;  %723 = vmatprep.subr.bf16.mxu0 %v4164_v20  ;;  %v71_v54 = vrot.slane %v4821_v52, 4  ;;  %v4217_v61 = vld [vmem:[%s6048_s1 + $0x1e8] ss:$24 sps:$4 sm:$0xff]   ;;  %v4218_v62 = vld [vmem:[%s6048_s1 + $0x1b4] ss:$24 sps:$4 sm:$0xff]   ;;  %v3562_v7 = vld [vmem:[%s6049_s0 + $0x18] sm:$0xff] }
  0x15   :  { %794 = vmatprep.subr.bf16.mxu1 %v4166_v21  ;;  %v4220_v63 = vld [vmem:[%s6048_s1 + $0x1bc] ss:$24 sps:$4 sm:$0xff]   ;;  %v3563_v0 = vld [vmem:[%s6049_s0 + $0x20] sm:$0xff]  ;;  %v4222_v1 = vld [vmem:[%s6048_s1 + $0x1b0] ss:$24 sps:$4 sm:$0xff]   ;;  %v70_v11 = vrot.slane %v49_v51, 4  ;;  %v55_v13 = vpack.c.bf16 %v3562_v7, %v3562_v7 }
  0x16   :  { %v4837_v58 = vsel %vm80_vm0, %v49_v51, %v71_v54  ;;  %v4223_v2 = vld [vmem:[%s6048_s1 + $0x1b8] ss:$24 sps:$4 sm:$0xff]   ;;  %v4224_v3 = vld [vmem:[%s6048_s1 + $0x184] ss:$24 sps:$4 sm:$0xff]   ;;  %v4874_v6 = vpack.c.bf16 %v3563_v0, %v3563_v0  ;;  %v4229_v9 = vld [vmem:[%s6048_s1 + $0x188] ss:$24 sps:$4 sm:$0xff]  }
  0x17   :  { %724 = vmatpush1.bf16.msra.mxu0 %v4168_v22  ;;  %745 = vmatprep.mubr.bf16.mxu0 %v4837_v58  ;;  %v4226_v4 = vld [vmem:[%s6048_s1 + $0x18c] ss:$24 sps:$4 sm:$0xff]   ;;  %v4228_v8 = vld [vmem:[%s6048_s1 + $0x180] ss:$24 sps:$4 sm:$0xff]   ;;  %v3565_v15 = vld [vmem:[%s6049_s0 + $0x30] sm:$0xff]  ;;  %vm2898_vm6 = vcmask 523264  }
  0x18   :  { %795 = vmatpush1.bf16.msra.mxu1 %v4169_v23  ;;  %725 = vmatprep.subr.bf16.mxu0 %v4170_v24  ;;  %v45_v5 = vld [vmem:[%s6049_s0] sm:$0xff]  ;;  %v75_v14 = vrot.slane %v4874_v6, 4  ;;  %v4235_v18 = vld [vmem:[%s6048_s1 + $0x134] ss:$24 sps:$4 sm:$0xff]   ;;  %v4904_v20 = vpack.c.bf16 %v3565_v15, %v3565_v15  ;;  %v4233_v21 = vld [vmem:[%s6048_s1 + $0x130] ss:$24 sps:$4 sm:$0xff]  }
  0x19   :  { %796 = vmatprep.subr.bf16.mxu1 %v4172_v25  ;;  %816 = vmatprep.mubr.bf16.mxu1 %v4837_v58  ;;  %v46_v10 = vpack.c.bf16 %v45_v5, %v45_v5  ;;  %v4232_v12 = vld [vmem:[%s6048_s1 + $0x164] ss:$24 sps:$4 sm:$0xff]   ;;  %v4230_v17 = vld [vmem:[%s6048_s1 + $0x160] ss:$24 sps:$4 sm:$0xff]   ;;  %v3564_v22 = vld [vmem:[%s6049_s0 + $0x28] sm:$0xff]  ;;  %v74_v24 = vrot.slane %v55_v13, 4 }
  0x1a   :  { %v4902_v19 = vsel %vm80_vm0, %v55_v13, %v75_v14  ;;  %v4278_v23 = vld [vmem:[%s6050_s3 + $0x70] ss:$8 sps:$4 sm:$0xff]   ;;  %v4280_v25 = vld [vmem:[%s6050_s3 + $0x74] ss:$8 sps:$4 sm:$0xff]   ;;  %v4298_v46 = vld [vmem:[%s6050_s3 + $0x44] ss:$8 sps:$4 sm:$0xff]  }
  0x1b   :  { %726 = vmatpush1.bf16.msra.mxu0 %v4174_v26  ;;  %v4893_v16 = vsel %vm80_vm0, %v46_v10, %v70_v11  ;;  %v4238_v26 = vld [vmem:[%s6048_s1 + $0x104] ss:$24 sps:$4 sm:$0xff]   ;;  %v4253_v51 = vld [vmem:[%s6048_s1 + $0x14] ss:$24 sps:$4 sm:$0xff]   ;;  %v4251_v54 = vld [vmem:[%s6048_s1 + $0x10] ss:$24 sps:$4 sm:$0xff]  }
  0x1c   :  { %797 = vmatpush1.bf16.msra.mxu1 %v4175_v27  ;;  %727 = vmatprep.subr.bf16.mxu0 %v4176_v28  ;;  %v61_v27 = vpack.c.bf16 %v3564_v22, %v3564_v22  ;;  %v79_v28 = vrot.slane %v4904_v20, 4  ;;  %v4304_v48 = vld [vmem:[%s6050_s3 + $0x34] ss:$8 sps:$4 sm:$0xff]   ;;  %v4320_v0 = vld [vmem:[%s6050_s3] ss:$8 sps:$4 sm:$0xff]   ;;  %s4597_s15 = smov 64  }
  0x1d   :  { %798 = vmatprep.subr.bf16.mxu1 %v4178_v29  ;;  %v4286_v29 = vld [vmem:[%s6050_s3 + $0x64] ss:$8 sps:$4 sm:$0xff]   ;;  %v4266_v10 = vld [vmem:[%s6048_s1 + $0x220] ss:$24 sps:$4 sm:$0xff]   ;;  %v4269_v14 = vld [vmem:[%s6048_s1 + $0x1f0] ss:$24 sps:$4 sm:$0xff]  }
  0x1e   :  { %v4334_v5 = vld [vmem:[%s6050_s3 + $0xe4] ss:$8 sps:$4 sm:$0xff]   ;;  %vm3042_vm7 = vcmask 916480   ;;  %vm3256_vm8 = vcmask 130048   ;;  %vm3511_vm9 = vcmask 1041408   ;;  %vm3507_vm10 = vcmask 687104  }
  0x1f   :  { %728 = vmatpush1.bf16.msra.mxu0 %v4180_v30  ;;  %v4236_v30 = vld [vmem:[%s6048_s1 + $0x100] ss:$24 sps:$4 sm:$0xff]   ;;  %v4268_v7 = vld [vmem:[%s6048_s1 + $0x224] ss:$24 sps:$4 sm:$0xff]   ;;  %v4271_v11 = vld [vmem:[%s6048_s1 + $0x1f4] ss:$24 sps:$4 sm:$0xff]  }
  0x20   :  { %799 = vmatpush1.bf16.msra.mxu1 %v4181_v31  ;;  %729 = vmatprep.subr.bf16.mxu0 %v4182_v32  ;;  %v4934_v31 = vsel %vm80_vm0, %v4821_v52, %v74_v24  ;;  %v4241_v32 = vld [vmem:[%s6048_s1 + $0xd4] ss:$24 sps:$4 sm:$0xff]   ;;  %v4302_v52 = vld [vmem:[%s6050_s3 + $0x30] ss:$8 sps:$4 sm:$0xff]   ;;  %v4274_v15 = vld [vmem:[%s6048_s1 + $0x1c4] ss:$24 sps:$4 sm:$0xff]  }
  0x21   :  { %800 = vmatprep.subr.bf16.mxu1 %v4184_v33  ;;  %v4940_v33 = vsel %vm80_vm0, %v61_v27, %v79_v28  ;;  %v4346_v13 = vld [vmem:[%s6050_s3 + $0xc4] ss:$8 sps:$4 sm:$0xff]   ;;  %v4275_v24 = vld [vmem:[%s6048_s1 + $0x190] ss:$24 sps:$4 sm:$0xff]  }
  0x22   :  { %v4277_v22 = vld [vmem:[%s6048_s1 + $0x194] ss:$24 sps:$4 sm:$0xff]  }
  0x23   :  { %730 = vmatpush2.bf16.msra.mxu0 %v4186_v34  ;;  %v4284_v34 = vld [vmem:[%s6050_s3 + $0x60] ss:$8 sps:$4 sm:$0xff]   ;;  %v4358_v28 = vld [vmem:[%s6050_s3 + $0xa4] ss:$8 sps:$4 sm:$0xff]  }
  0x24   :  { %801 = vmatpush2.bf16.msra.mxu1 %v4187_v35  ;;  %731 = vmatprep.subr.bf16.mxu0 %v4188_v36  ;;  %v4292_v35 = vld [vmem:[%s6050_s3 + $0x54] ss:$8 sps:$4 sm:$0xff]   ;;  %v4239_v36 = vld [vmem:[%s6048_s1 + $0xd0] ss:$24 sps:$4 sm:$0xff]  }
  0x25   :  { %802 = vmatprep.subr.bf16.mxu1 %v4190_v37  ;;  %v78_v37 = vrot.slane %v61_v27, 4  ;;  %v4289_v27 = vld [vmem:[%s6050_s3 + $0x164] ss:$8 sps:$4 sm:$0xff]  }
  0x27   :  { %732 = vmatpush2.bf16.msra.mxu0 %v4192_v38  ;;  %v4244_v38 = vld [vmem:[%s6048_s1 + $0xa4] ss:$24 sps:$4 sm:$0xff]  }
  0x28   :  { %803 = vmatpush2.bf16.msra.mxu1 %v4193_v39  ;;  %733 = vmatprep.subr.bf16.mxu0 %v4194_v40  ;;  %v3566_v39 = vld [vmem:[%s6049_s0 + $0x38] sm:$0xff]  ;;  %s4596_s0 = smov 112  }
  0x29   :  { %804 = vmatprep.subr.bf16.mxu1 %v4196_v41  ;;  %v4290_v40 = vld [vmem:[%s6050_s3 + $0x50] ss:$8 sps:$4 sm:$0xff]  }
  0x2a   :  { %v4242_v41 = vld [vmem:[%s6048_s1 + $0xa0] ss:$24 sps:$4 sm:$0xff]  }
  0x2b   :  { %734 = vmatpush2.bf16.msra.mxu0 %v4198_v42  ;;  %v4969_v42 = vsel %vm80_vm0, %v4874_v6, %v78_v37  ;;  %v4263_v6 = vld [vmem:[%s6048_s1 + $0x250] ss:$24 sps:$4 sm:$0xff]  }
  0x2c   :  { %805 = vmatpush2.bf16.msra.mxu1 %v4199_v43  ;;  %735 = vmatprep.subr.bf16.mxu0 %v4200_v44  ;;  %v4971_v43 = vpack.c.bf16 %v3566_v39, %v3566_v39  ;;  %v4247_v44 = vld [vmem:[%s6048_s1 + $0x74] ss:$24 sps:$4 sm:$0xff]   ;;  %v4299_v37 = vld [vmem:[%s6050_s3 + $0x140] ss:$8 sps:$4 sm:$0xff]  }
  0x2d   :  { %806 = vmatprep.subr.bf16.mxu1 %v4202_v45  ;;  %v4245_v45 = vld [vmem:[%s6048_s1 + $0x70] ss:$24 sps:$4 sm:$0xff]   ;;  %v4313_v39 = vld [vmem:[%s6050_s3 + $0x124] ss:$8 sps:$4 sm:$0xff]  }
  0x2f   :  { %736 = vmatpush2.bf16.msra.mxu0 %v4204_v47  ;;  %v4296_v47 = vld [vmem:[%s6050_s3 + $0x40] ss:$8 sps:$4 sm:$0xff]  }
  0x30   :  { %807 = vmatpush2.bf16.msra.mxu1 %v4205_v49  ;;  %737 = vmatprep.subr.bf16.mxu0 %v4206_v50  ;;  %v4250_v49 = vld [vmem:[%s6048_s1 + $0x44] ss:$24 sps:$4 sm:$0xff]   ;;  %v4248_v50 = vld [vmem:[%s6048_s1 + $0x40] ss:$24 sps:$4 sm:$0xff]  }
  0x31   :  { %808 = vmatprep.subr.bf16.mxu1 %v4208_v53  ;;  %v4310_v53 = vld [vmem:[%s6050_s3 + $0x24] ss:$8 sps:$4 sm:$0xff]  }
  0x33   :  { %738 = vmatpush2.bf16.msra.mxu0 %v4210_v55  ;;  %v4256_v55 = vld [vmem:[%s6048_s1 + $0x2e4] ss:$24 sps:$4 sm:$0xff]  }
  0x34   :  { %809 = vmatpush2.bf16.msra.mxu1 %v4211_v56  ;;  %739 = vmatprep.subr.bf16.mxu0 %v4212_v57  ;;  %v4308_v56 = vld [vmem:[%s6050_s3 + $0x20] ss:$8 sps:$4 sm:$0xff]   ;;  %v4316_v57 = vld [vmem:[%s6050_s3 + $0x14] ss:$8 sps:$4 sm:$0xff]  }
  0x35   :  { %810 = vmatprep.subr.bf16.mxu1 %v4214_v59  ;;  %v4259_v59 = vld [vmem:[%s6048_s1 + $0x2b4] ss:$24 sps:$4 sm:$0xff]  }
  0x37   :  { %740 = vmatpush2.bf16.msra.mxu0 %v4216_v60  ;;  %v4314_v60 = vld [vmem:[%s6050_s3 + $0x10] ss:$8 sps:$4 sm:$0xff]  }
  0x38   :  { %811 = vmatpush2.bf16.msra.mxu1 %v4217_v61  ;;  %741 = vmatprep.subr.bf16.mxu0 %v4218_v62  ;;  %v4322_v61 = vld [vmem:[%s6050_s3 + $0x4] ss:$8 sps:$4 sm:$0xff]   ;;  %v4257_v62 = vld [vmem:[%s6048_s1 + $0x2b0] ss:$24 sps:$4 sm:$0xff]  }
  0x39   :  { %812 = vmatprep.subr.bf16.mxu1 %v4220_v63  ;;  %v4262_v63 = vld [vmem:[%s6048_s1 + $0x284] ss:$24 sps:$4 sm:$0xff]  }
  0x3b   :  { %742 = vmatpush2.bf16.msra.mxu0 %v4222_v1  ;;  %v4328_v1 = vld [vmem:[%s6050_s3 + $0xf4] ss:$8 sps:$4 sm:$0xff]  }
  0x3c   :  { %813 = vmatpush2.bf16.msra.mxu1 %v4223_v2  ;;  %743 = vmatprep.subr.bf16.mxu0 %v4224_v3  ;;  %v4260_v2 = vld [vmem:[%s6048_s1 + $0x280] ss:$24 sps:$4 sm:$0xff]   ;;  %v4265_v3 = vld [vmem:[%s6048_s1 + $0x254] ss:$24 sps:$4 sm:$0xff]  }
  0x3d   :  { %814 = vmatprep.subr.bf16.mxu1 %v4226_v4  ;;  %v4326_v4 = vld [vmem:[%s6050_s3 + $0xf0] ss:$8 sps:$4 sm:$0xff]  }
  0x3f   :  { %744 = vmatpush2.bf16.msra.mxu0 %v4228_v8  ;;  %v4332_v8 = vld [vmem:[%s6050_s3 + $0xe0] ss:$8 sps:$4 sm:$0xff]  }
  0x40   :  { %815 = vmatpush2.bf16.msra.mxu1 %v4229_v9  ;;  %855 = vmatprep.subr.bf16.mxu0 %v4232_v12  ;;  %v4340_v9 = vld [vmem:[%s6050_s3 + $0xd4] ss:$8 sps:$4 sm:$0xff]   ;;  %v4338_v12 = vld [vmem:[%s6050_s3 + $0xd0] ss:$8 sps:$4 sm:$0xff]  }
  0x41   :  { %1509 = vmatprep.subr.bf16.mxu1 %v4280_v25  ;;  %v4283_v25 = vld [vmem:[%s6050_s3 + $0x174] ss:$8 sps:$4 sm:$0xff]  }
  0x42   :  { %746 = vmatmul.mubr.bf16.vlgmr.msra.gmra.mxu0 %v4893_v16 }
  0x43   :  { %817 = vmatmul.mubr.bf16.vlgmr.msra.gmra.mxu1 %v4893_v16  ;;  %856 = vmatpush1.bf16.msra.mxu0 %v4230_v17  ;;  %v4344_v17 = vld [vmem:[%s6050_s3 + $0xc0] ss:$8 sps:$4 sm:$0xff]  }
  0x44   :  { %755 = vmatprep.mubr.bf16.mxu0 %v4902_v19  ;;  %857 = vmatprep.subr.bf16.mxu0 %v4235_v18  ;;  %v4352_v18 = vld [vmem:[%s6050_s3 + $0xb4] ss:$8 sps:$4 sm:$0xff]  }
  0x45   :  { %826 = vmatprep.mubr.bf16.mxu1 %v4902_v19  ;;  %1510 = vmatpush1.bf16.msra.mxu1 %v4278_v23  ;;  %v4350_v23 = vld [vmem:[%s6050_s3 + $0xb0] ss:$8 sps:$4 sm:$0xff]  }
  0x46   :  { %1511 = vmatprep.subr.bf16.mxu1 %v4286_v29  ;;  %v4287_v29 = vld [vmem:[%s6050_s3 + $0x160] ss:$8 sps:$4 sm:$0xff]  }
  0x47   :  { %858 = vmatpush1.bf16.msra.mxu0 %v4233_v21  ;;  %v4272_v21 = vld [vmem:[%s6048_s1 + $0x1c0] ss:$24 sps:$4 sm:$0xff]  }
  0x48   :  { %859 = vmatprep.subr.bf16.mxu0 %v4238_v26  ;;  %v4281_v26 = vld [vmem:[%s6050_s3 + $0x170] ss:$8 sps:$4 sm:$0xff]  }
  0x49   :  { %1512 = vmatpush1.bf16.msra.mxu1 %v4284_v34  ;;  %v4362_v34 = vld [vmem:[%s6050_s3 + $0x90] ss:$8 sps:$4 sm:$0xff]  }
  0x4a   :  { %756 = vmatmul.mubr.bf16.gmra.mxu0 %v4934_v31  ;;  %1513 = vmatprep.subr.bf16.mxu1 %v4292_v35  ;;  %v4301_v35 = vld [vmem:[%s6050_s3 + $0x144] ss:$8 sps:$4 sm:$0xff]  }
  0x4b   :  { %827 = vmatmul.mubr.bf16.gmra.mxu1 %v4934_v31  ;;  %860 = vmatpush1.bf16.msra.mxu0 %v4236_v30  ;;  %v4356_v30 = vld [vmem:[%s6050_s3 + $0xa0] ss:$8 sps:$4 sm:$0xff]  }
  0x4c   :  { %765 = vmatprep.mubr.bf16.mxu0 %v4940_v33  ;;  %861 = vmatprep.subr.bf16.mxu0 %v4241_v32  ;;  %v4293_v32 = vld [vmem:[%s6050_s3 + $0x150] ss:$8 sps:$4 sm:$0xff]  }
  0x4d   :  { %836 = vmatprep.mubr.bf16.mxu1 %v4940_v33  ;;  %1514 = vmatpush1.bf16.msra.mxu1 %v4290_v40  ;;  %v4311_v40 = vld [vmem:[%s6050_s3 + $0x120] ss:$8 sps:$4 sm:$0xff]  }
  0x4e   :  { %1515 = vmatprep.subr.bf16.mxu1 %v4298_v46  ;;  %v4331_v46 = vld [vmem:[%s6050_s3 + $0x1f4] ss:$8 sps:$4 sm:$0xff]  }
  0x4f   :  { %862 = vmatpush1.bf16.msra.mxu0 %v4239_v36  ;;  %v4370_v36 = vld [vmem:[%s6050_s3 + $0x84] ss:$8 sps:$4 sm:$0xff]  }
  0x50   :  { %863 = vmatprep.subr.bf16.mxu0 %v4244_v38  ;;  %v4368_v38 = vld [vmem:[%s6050_s3 + $0x80] ss:$8 sps:$4 sm:$0xff]  }
  0x51   :  { %1516 = vmatpush1.bf16.msra.mxu1 %v4296_v47  ;;  %v4329_v47 = vld [vmem:[%s6050_s3 + $0x1f0] ss:$8 sps:$4 sm:$0xff]  }
  0x52   :  { %766 = vmatmul.mubr.bf16.gmra.mxu0 %v4969_v42  ;;  %1517 = vmatprep.subr.bf16.mxu1 %v4304_v48  ;;  %v4335_v48 = vld [vmem:[%s6050_s3 + $0x1e0] ss:$8 sps:$4 sm:$0xff]  }
  0x53   :  { %837 = vmatmul.mubr.bf16.gmra.mxu1 %v4969_v42  ;;  %864 = vmatpush1.bf16.msra.mxu0 %v4242_v41  ;;  %v4319_v41 = vld [vmem:[%s6050_s3 + $0x114] ss:$8 sps:$4 sm:$0xff]  }
  0x54   :  { %775 = vmatprep.mubr.bf16.mxu0 %v4971_v43  ;;  %865 = vmatprep.subr.bf16.mxu0 %v4247_v44  ;;  %v4317_v44 = vld [vmem:[%s6050_s3 + $0x110] ss:$8 sps:$4 sm:$0xff]  }
  0x55   :  { %846 = vmatprep.mubr.bf16.mxu1 %v4971_v43  ;;  %1518 = vmatpush1.bf16.msra.mxu1 %v4302_v52  ;;  %v4347_v52 = vld [vmem:[%s6050_s3 + $0x1c0] ss:$8 sps:$4 sm:$0xff]  }
  0x56   :  { %1519 = vmatprep.subr.bf16.mxu1 %v4310_v53  ;;  %v4355_v53 = vld [vmem:[%s6050_s3 + $0x1b4] ss:$8 sps:$4 sm:$0xff]  }
  0x57   :  { %866 = vmatpush1.bf16.msra.mxu0 %v4245_v45  ;;  %v4323_v45 = vld [vmem:[%s6050_s3 + $0x100] ss:$8 sps:$4 sm:$0xff]  }
  0x58   :  { %867 = vmatprep.subr.bf16.mxu0 %v4250_v49  ;;  %v4343_v49 = vld [vmem:[%s6050_s3 + $0x1d4] ss:$8 sps:$4 sm:$0xff]  }
  0x59   :  { %1520 = vmatpush1.bf16.msra.mxu1 %v4308_v56  ;;  %v4359_v56 = vld [vmem:[%s6050_s3 + $0x1a0] ss:$8 sps:$4 sm:$0xff]  }
  0x5a   :  { %776 = vmatmul.mubr.bf16.gmra.mxu0 %v4904_v20  ;;  %1521 = vmatprep.subr.bf16.mxu1 %v4316_v57  ;;  %v4367_v57 = vld [vmem:[%s6050_s3 + $0x194] ss:$8 sps:$4 sm:$0xff]  }
  0x5b   :  { %847 = vmatmul.mubr.bf16.gmra.mxu1 %v4904_v20  ;;  %868 = vmatpush1.bf16.msra.mxu0 %v4248_v50  ;;  %v4341_v50 = vld [vmem:[%s6050_s3 + $0x1d0] ss:$8 sps:$4 sm:$0xff]  }
  0x5c   :  { %887 = vmatprep.mubr.bf16.mxu0 %v4837_v58  ;;  %869 = vmatprep.subr.bf16.mxu0 %v4253_v51  ;;  %v4254_v58 = vld [vmem:[%s6048_s1 + $0x2e0] ss:$24 sps:$4 sm:$0xff]   ;;  %v4349_v51 = vld [vmem:[%s6050_s3 + $0x1c4] ss:$8 sps:$4 sm:$0xff]  }
  0x5d   :  { %1522 = vmatpush1.bf16.msra.mxu1 %v4314_v60  ;;  %v4371_v60 = vld [vmem:[%s6050_s3 + $0x180] ss:$8 sps:$4 sm:$0xff]  }
  0x5e   :  { %1523 = vmatprep.subr.bf16.mxu1 %v4322_v61  ;;  %v203_v61 = vlaneseq }
  0x5f   :  { %870 = vmatpush1.bf16.msra.mxu0 %v4251_v54  ;;  %v4353_v54 = vld [vmem:[%s6050_s3 + $0x1b0] ss:$8 sps:$4 sm:$0xff]  }
  0x60   :  { %871 = vmatprep.subr.bf16.mxu0 %v4256_v55  ;;  %v4361_v55 = vld [vmem:[%s6050_s3 + $0x1a4] ss:$8 sps:$4 sm:$0xff]  }
  0x61   :  { %1524 = vmatpush1.bf16.msra.mxu1 %v4320_v0 }
  0x62   :  { %1525 = vmatprep.subr.bf16.mxu1 %v4328_v1  ;;  %v5237_v1 = vld [vmem:[%s6051_s2] sm:$0x3f] }
  0x63   :  { %872 = vmatpush2.bf16.msra.mxu0 %v4254_v58  ;;  %v4365_v58 = vld [vmem:[%s6050_s3 + $0x190] ss:$8 sps:$4 sm:$0xff]  }
  0x64   :  { %873 = vmatprep.subr.bf16.mxu0 %v4259_v59  ;;  %v4373_v59 = vld [vmem:[%s6050_s3 + $0x184] ss:$8 sps:$4 sm:$0xff]  }
  0x65   :  { %1526 = vmatpush2.bf16.msra.mxu1 %v4326_v4 }
  0x66   :  { %1527 = vmatprep.subr.bf16.mxu1 %v4334_v5 }
  0x67   :  { %874 = vmatpush2.bf16.msra.mxu0 %v4257_v62  ;;  %v5230_v62 = vshrl.u32 %v203_v61, 7 }
  0x68   :  { %875 = vmatprep.subr.bf16.mxu0 %v4262_v63 }
  0x69   :  { %1528 = vmatpush2.bf16.msra.mxu1 %v4332_v8  ;;  %v213_v63 = vsub.s32 2, %v5230_v62  ;;  %v217_v0 = vsub.s32 3, %v5230_v62 }
  0x6a   :  { %1529 = vmatprep.subr.bf16.mxu1 %v4340_v9 }
  0x6b   :  { %876 = vmatpush2.bf16.msra.mxu0 %v4260_v2  ;;  %v209_v2 = vsub.s32 1, %v5230_v62  ;;  %v5244_v4 = vrot.slane %v5237_v1, %v213_v63  ;;  %v5247_v5 = vrot.slane %v5237_v1, %v217_v0 }
  0x6c   :  { %877 = vmatprep.subr.bf16.mxu0 %v4265_v3  ;;  %v205_v3 = vsub.s32 0, %v5230_v62 }
  0x6d   :  { %1530 = vmatpush2.bf16.msra.mxu1 %v4338_v12  ;;  %v5252_v8 = vrot.slane %v5237_v1, %v209_v2 }
  0x6e   :  { %1531 = vmatprep.subr.bf16.mxu1 %v4346_v13  ;;  %v5257_v9 = vrot.slane %v5237_v1, %v205_v3 }
  0x6f   :  { %878 = vmatpush2.bf16.msra.mxu0 %v4263_v6 }
  0x70   :  { %879 = vmatprep.subr.bf16.mxu0 %v4268_v7 }
  0x71   :  { %1532 = vmatpush2.bf16.msra.mxu1 %v4344_v17 }
  0x72   :  { %1533 = vmatprep.subr.bf16.mxu1 %v4352_v18 }
  0x73   :  { %880 = vmatpush2.bf16.msra.mxu0 %v4266_v10 }
  0x74   :  { %881 = vmatprep.subr.bf16.mxu0 %v4271_v11 }
  0x75   :  { %1534 = vmatpush2.bf16.msra.mxu1 %v4350_v23 }
  0x76   :  { %1535 = vmatprep.subr.bf16.mxu1 %v4358_v28 }
  0x77   :  { %882 = vmatpush2.bf16.msra.mxu0 %v4269_v14 }
  0x78   :  { %883 = vmatprep.subr.bf16.mxu0 %v4274_v15 }
  0x79   :  { %1536 = vmatpush2.bf16.msra.mxu1 %v4356_v30 }
  0x7b   :  { %884 = vmatpush2.bf16.msra.mxu0 %v4272_v21 }
  0x7c   :  { %885 = vmatprep.subr.bf16.mxu0 %v4277_v22 }
  0x7f   :  { %886 = vmatpush2.bf16.msra.mxu0 %v4275_v24 }
  0x80   :  { %1580 = vmatprep.subr.bf16.mxu0 %v4283_v25 }
  0x82   :  { %888 = vmatmul.mubr.bf16.vlgmr.msra.gmra.mxu0 %v4893_v16  ;;  %v4295_v16 = vld [vmem:[%s6050_s3 + $0x154] ss:$8 sps:$4 sm:$0xff]  }
  0x83   :  { %897 = vmatprep.mubr.bf16.mxu0 %v4902_v19  ;;  %1581 = vmatpush1.bf16.msra.mxu0 %v4281_v26  ;;  %v4364_v19 = vld [vmem:[%s6050_s3 + $0x94] ss:$8 sps:$4 sm:$0xff]  }
  0x84   :  { %1582 = vmatprep.subr.bf16.mxu0 %v4289_v27  ;;  %1537 = vmatprep.subr.bf16.mxu1 %v4364_v19 }
  0x85   :  { %1538 = vmatpush2.bf16.msra.mxu1 %v4362_v34 }
  0x86   :  { %1539 = vmatprep.subr.bf16.mxu1 %v4370_v36 }
  0x87   :  { %1583 = vmatpush1.bf16.msra.mxu0 %v4287_v29 }
  0x88   :  { %1584 = vmatprep.subr.bf16.mxu0 %v4295_v16 }
  0x89   :  { %1540 = vmatpush2.bf16.msra.mxu1 %v4368_v38 }
  0x8a   :  { %898 = vmatmul.mubr.bf16.gmra.mxu0 %v4934_v31  ;;  %v4307_v31 = vld [vmem:[%s6050_s3 + $0x134] ss:$8 sps:$4 sm:$0xff]  }
  0x8b   :  { %907 = vmatprep.mubr.bf16.mxu0 %v4940_v33  ;;  %1585 = vmatpush1.bf16.msra.mxu0 %v4293_v32  ;;  %v4305_v33 = vld [vmem:[%s6050_s3 + $0x130] ss:$8 sps:$4 sm:$0xff]  }
  0x8c   :  { %1586 = vmatprep.subr.bf16.mxu0 %v4301_v35 }
  0x8f   :  { %1587 = vmatpush1.bf16.msra.mxu0 %v4299_v37 }
  0x90   :  { %1588 = vmatprep.subr.bf16.mxu0 %v4307_v31 }
  0x92   :  { %908 = vmatmul.mubr.bf16.gmra.mxu0 %v4969_v42  ;;  %v4376_v42 = vld [vmem:[%s6050_s3 + $0x274] ss:$8 sps:$4 sm:$0xff]  }
  0x93   :  { %917 = vmatprep.mubr.bf16.mxu0 %v4971_v43  ;;  %1589 = vmatpush1.bf16.msra.mxu0 %v4305_v33  ;;  %v4325_v43 = vld [vmem:[%s6050_s3 + $0x104] ss:$8 sps:$4 sm:$0xff]  }
  0x94   :  { %1590 = vmatprep.subr.bf16.mxu0 %v4313_v39  ;;  %1651 = vmatprep.subr.bf16.mxu1 %v4376_v42 }
  0x97   :  { %1591 = vmatpush1.bf16.msra.mxu0 %v4311_v40 }
  0x98   :  { %1592 = vmatprep.subr.bf16.mxu0 %v4319_v41 }
  0x9a   :  { %918 = vmatmul.mubr.bf16.gmra.mxu0 %v4904_v20  ;;  %v4337_v20 = vld [vmem:[%s6050_s3 + $0x1e4] ss:$8 sps:$4 sm:$0xff]  }
  0x9b   :  { %1593 = vmatpush1.bf16.msra.mxu0 %v4317_v44 }
  0x9c   :  { %1594 = vmatprep.subr.bf16.mxu0 %v4325_v43  ;;  %v4374_v43 = vld [vmem:[%s6050_s3 + $0x270] ss:$8 sps:$4 sm:$0xff]  }
  0x9f   :  { %1595 = vmatpush1.bf16.msra.mxu0 %v4323_v45 }
  0xa0   :  { %1596 = vmatprep.subr.bf16.mxu0 %v4331_v46 }
  0xa3   :  { %1597 = vmatpush2.bf16.msra.mxu0 %v4329_v47 }
  0xa4   :  { %1598 = vmatprep.subr.bf16.mxu0 %v4337_v20  ;;  %v4379_v20 = vld [vmem:[%s6050_s3 + $0x264] ss:$8 sps:$4 sm:$0xff]  }
  0xa7   :  { %1599 = vmatpush2.bf16.msra.mxu0 %v4335_v48 }
  0xa8   :  { %1600 = vmatprep.subr.bf16.mxu0 %v4343_v49 }
  0xab   :  { %1601 = vmatpush2.bf16.msra.mxu0 %v4341_v50 }
  0xac   :  { %1602 = vmatprep.subr.bf16.mxu0 %v4349_v51 }
  0xaf   :  { %1603 = vmatpush2.bf16.msra.mxu0 %v4347_v52 }
  0xb0   :  { %1604 = vmatprep.subr.bf16.mxu0 %v4355_v53 }
  0xb3   :  { %1605 = vmatpush2.bf16.msra.mxu0 %v4353_v54 }
  0xb4   :  { %1606 = vmatprep.subr.bf16.mxu0 %v4361_v55 }
  0xb7   :  { %1607 = vmatpush2.bf16.msra.mxu0 %v4359_v56 }
  0xb8   :  { %1608 = vmatprep.subr.bf16.mxu0 %v4367_v57 }
  0xbb   :  { %1609 = vmatpush2.bf16.msra.mxu0 %v4365_v58 }
  0xbc   :  { %1610 = vmatprep.subr.bf16.mxu0 %v4373_v59 }
  0xbf   :  { %1611 = vmatpush2.bf16.msra.mxu0 %v4371_v60  ;;  %v4377_v60 = vld [vmem:[%s6050_s3 + $0x260] ss:$8 sps:$4 sm:$0xff]  }
 0x102   :  { %v747_v6 = vpop.f32.mrf.mxu0 }
 0x103   :  { %v818_v7 = vpop.f32.mrf.mxu1  ;;  %v748_v22 = vadd.f32 %v747_v6, %v5257_v9  ;;  %v4382_v6 = vld [vmem:[%s6050_s3 + $0x254] ss:$8 sps:$4 sm:$0xff]  }
 0x104   :  { %v819_v10 = vadd.f32 %v818_v7, %v5244_v4  ;;  %v749_v11 = vpop.f32.mrf.mxu0 }
 0x105   :  { %v820_v12 = vpop.f32.mrf.mxu1  ;;  %v750_v17 = vadd.f32 %v749_v11, %v5252_v8  ;;  %v926_v36 = vmax.f32 %v748_v22, 0.0 }
 0x106   :  { %v821_v13 = vadd.f32 %v820_v12, %v5247_v5  ;;  %v751_v14 = vpop.f32.mrf.mxu0  ;;  %v928_v23 = vmax.f32 %v819_v10, 0.0 }
 0x107   :  { %v822_v15 = vpop.f32.mrf.mxu1  ;;  %v752_v18 = vadd.f32 %v751_v14, %v5257_v9  ;;  %v927_v32 = vmax.f32 %v750_v17, 0.0 }
 0x108   :  { %v823_v21 = vadd.f32 %v822_v15, %v5244_v4  ;;  %v753_v24 = vpop.f32.mrf.mxu0  ;;  %v929_v26 = vmax.f32 %v821_v13, 0.0 }
 0x109   :  { %v824_v25 = vpop.f32.mrf.mxu1  ;;  %v754_v28 = vadd.f32 %v753_v24, %v5252_v8  ;;  %v932_v30 = vmax.f32 %v752_v18, 0.0  ;;  %v4380_v24 = vld [vmem:[%s6050_s3 + $0x250] ss:$8 sps:$4 sm:$0xff]  }
 0x10a   :  { %v934_v27 = vmax.f32 %v823_v21, 0.0  ;;  %v825_v29 = vadd.f32 %v824_v25, %v5247_v5  ;;  %v757_v16 = vpop.f32.mrf.mxu0 }
 0x10b   :  { %v828_v19 = vpop.f32.mrf.mxu1  ;;  %v933_v34 = vmax.f32 %v754_v28, 0.0  ;;  %v758_v38 = vadd.f32 %v757_v16, %v5257_v9  ;;  %v968_v45 = vpack.c.bf16 %v932_v30, %v926_v36 }
 0x10c   :  { %v935_v35 = vmax.f32 %v825_v29, 0.0  ;;  %v970_v37 = vpack.c.bf16 %v934_v27, %v928_v23  ;;  %v829_v31 = vadd.f32 %v828_v19, %v5244_v4  ;;  %v759_v33 = vpop.f32.mrf.mxu0  ;;  %v4385_v27 = vld [vmem:[%s6050_s3 + $0x244] ss:$8 sps:$4 sm:$0xff]  }
 0x10d   :  { %v830_v39 = vpop.f32.mrf.mxu1  ;;  %v969_v40 = vpack.c.bf16 %v933_v34, %v927_v32  ;;  %v760_v44 = vadd.f32 %v759_v33, %v5252_v8  ;;  %v938_v50 = vmax.f32 %v758_v38, 0.0  ;;  %v4383_v33 = vld [vmem:[%s6050_s3 + $0x240] ss:$8 sps:$4 sm:$0xff]  }
 0x10e   :  { %v971_v41 = vpack.c.bf16 %v935_v35, %v929_v26  ;;  %v831_v42 = vadd.f32 %v830_v39, %v5247_v5  ;;  %v761_v46 = vpop.f32.mrf.mxu0  ;;  %v940_v51 = vmax.f32 %v829_v31, 0.0 }
 0x10f   :  { %v832_v47 = vpop.f32.mrf.mxu1  ;;  %1541 = vmatprep.mubr.bf16.mxu1 %v969_v40  ;;  %v762_v48 = vadd.f32 %v761_v46, %v5257_v9  ;;  %v939_v52 = vmax.f32 %v760_v44, 0.0 }
 0x110   :  { %1612 = vmatprep.mubr.bf16.mxu0 %v971_v41  ;;  %v833_v49 = vadd.f32 %v832_v47, %v5244_v4  ;;  %1542 = vmatmul.mubr.bf16.vlgmr.msra.gmra.mxu1 %v968_v45  ;;  %v941_v53 = vmax.f32 %v831_v42, 0.0  ;;  %v763_v54 = vpop.f32.mrf.mxu0  ;;  %v4388_v41 = vld [vmem:[%s6050_s3 + $0x234] ss:$8 sps:$4 sm:$0xff]  }
 0x111   :  { %1613 = vmatmul.mubr.bf16.vlgmr.msra.gmra.mxu0 %v970_v37  ;;  %v834_v55 = vpop.f32.mrf.mxu1  ;;  %v944_v56 = vmax.f32 %v762_v48, 0.0  ;;  %v764_v58 = vadd.f32 %v763_v54, %v5252_v8  ;;  %1652 = vmatpush1.bf16.msra.mxu1 %v4374_v43 }
 0x112   :  { %v946_v57 = vmax.f32 %v833_v49, 0.0  ;;  %v835_v59 = vadd.f32 %v834_v55, %v5247_v5  ;;  %v767_v61 = vpop.f32.mrf.mxu0  ;;  %1653 = vmatprep.subr.bf16.mxu1 %v4379_v20 }
 0x113   :  { %v838_v0 = vpop.f32.mrf.mxu1  ;;  %v945_v7 = vmax.f32 %v764_v58, 0.0  ;;  %v974_v11 = vpack.c.bf16 %v944_v56, %v938_v50  ;;  %v768_v13 = vadd.f32 %v767_v61, %v5257_v9  ;;  %v4389_v61 = vld [vmem:[%s6050_s3 + $0x220] ss:$8 sps:$4 sm:$0xff]  }
 0x114   :  { %v947_v10 = vmax.f32 %v835_v59, 0.0  ;;  %v976_v12 = vpack.c.bf16 %v946_v57, %v940_v51  ;;  %v839_v14 = vadd.f32 %v838_v0, %v5244_v4  ;;  %v769_v15 = vpop.f32.mrf.mxu0  ;;  %v4394_v0 = vld [vmem:[%s6050_s3 + $0x214] ss:$8 sps:$4 sm:$0xff]  }
 0x115   :  { %v840_v17 = vpop.f32.mrf.mxu1  ;;  %v975_v18 = vpack.c.bf16 %v945_v7, %v939_v52  ;;  %v770_v22 = vadd.f32 %v769_v15, %v5252_v8  ;;  %1654 = vmatpush1.bf16.msra.mxu1 %v4377_v60  ;;  %v950_v30 = vmax.f32 %v768_v13, 0.0  ;;  %v4400_v13 = vld [vmem:[%s6050_s3 + $0x294] ss:$8 sps:$4 sm:$0xff]   ;;  %v4403_v15 = vld [vmem:[%s6050_s3 + $0x284] ss:$8 sps:$4 sm:$0xff]  }
 0x116   :  { %v977_v21 = vpack.c.bf16 %v947_v10, %v941_v53  ;;  %v841_v23 = vadd.f32 %v840_v17, %v5247_v5  ;;  %v771_v25 = vpop.f32.mrf.mxu0  ;;  %1655 = vmatprep.subr.bf16.mxu1 %v4382_v6  ;;  %v952_v16 = vmax.f32 %v839_v14, 0.0  ;;  %v4386_v53 = vld [vmem:[%s6050_s3 + $0x230] ss:$8 sps:$4 sm:$0xff]   ;;  %v4401_v17 = vld [vmem:[%s6050_s3 + $0x280] ss:$8 sps:$4 sm:$0xff]  }
 0x117   :  { %v842_v26 = vpop.f32.mrf.mxu1  ;;  %v772_v28 = vadd.f32 %v771_v25, %v5257_v9  ;;  %1551 = vmatprep.mubr.bf16.mxu1 %v975_v18  ;;  %v951_v19 = vmax.f32 %v770_v22, 0.0  ;;  %v4392_v10 = vld [vmem:[%s6050_s3 + $0x210] ss:$8 sps:$4 sm:$0xff]   ;;  %v225_v18 = vsub.s32 5, %v5230_v62 }
 0x118   :  { %v843_v29 = vadd.f32 %v842_v26, %v5244_v4  ;;  %1622 = vmatprep.mubr.bf16.mxu0 %v977_v21  ;;  %v953_v32 = vmax.f32 %v841_v23, 0.0  ;;  %v773_v34 = vpop.f32.mrf.mxu0  ;;  %1552 = vmatmul.mubr.bf16.gmra.mxu1 %v974_v11  ;;  %v4397_v11 = vld [vmem:[%s6050_s3 + $0x204] ss:$8 sps:$4 sm:$0xff]   ;;  %v4398_v14 = vld [vmem:[%s6050_s3 + $0x290] ss:$8 sps:$4 sm:$0xff]   ;;  %v221_v21 = vsub.s32 4, %v5230_v62 }
 0x119   :  { %v844_v35 = vpop.f32.mrf.mxu1  ;;  %1623 = vmatmul.mubr.bf16.gmra.mxu0 %v976_v12  ;;  %v956_v36 = vmax.f32 %v772_v28, 0.0  ;;  %v774_v38 = vadd.f32 %v773_v34, %v5252_v8  ;;  %1656 = vmatpush1.bf16.msra.mxu1 %v4380_v24  ;;  %v4395_v12 = vld [vmem:[%s6050_s3 + $0x200] ss:$8 sps:$4 sm:$0xff]   ;;  %v226_v23 = vrot.slane %v5237_v1, %v225_v18  ;;  %v4412_v18 = vld [vmem:[%s6052_s4 + $0x22c] ss:$12 sps:$4 sm:$0xff]  }
 0x11a   :  { %v958_v37 = vmax.f32 %v843_v29, 0.0  ;;  %v845_v31 = vadd.f32 %v844_v35, %v5247_v5  ;;  %v777_v39 = vpop.f32.mrf.mxu0  ;;  %1657 = vmatprep.subr.bf16.mxu1 %v4385_v27  ;;  %v222_v24 = vrot.slane %v5237_v1, %v221_v21  ;;  %v4407_v21 = vld [vmem:[%s6052_s4 + $0x90] ss:$12 sps:$4 sm:$0xff]   ;;  %2541 = vmatprep.subr.bf16.mxu0 %v4412_v18 }
 0x11b   :  { %v848_v40 = vpop.f32.mrf.mxu1  ;;  %v957_v44 = vmax.f32 %v774_v38, 0.0  ;;  %v980_v43 = vpack.c.bf16 %v956_v36, %v950_v30  ;;  %v778_v46 = vadd.f32 %v777_v39, %v5257_v9  ;;  %v4391_v9 = vld [vmem:[%s6050_s3 + $0x224] ss:$8 sps:$4 sm:$0xff]  }
 0x11c   :  { %v959_v42 = vmax.f32 %v845_v31, 0.0  ;;  %v982_v45 = vpack.c.bf16 %v958_v37, %v952_v16  ;;  %v779_v47 = vpop.f32.mrf.mxu0  ;;  %v849_v20 = vadd.f32 %v848_v40, %v5244_v4 }
 0x11d   :  { %v850_v48 = vpop.f32.mrf.mxu1  ;;  %v981_v49 = vpack.c.bf16 %v957_v44, %v951_v19  ;;  %v780_v51 = vadd.f32 %v779_v47, %v5252_v8  ;;  %1658 = vmatpush1.bf16.msra.mxu1 %v4383_v33  ;;  %v962_v57 = vmax.f32 %v778_v46, 0.0 }
 0x11e   :  { %v983_v50 = vpack.c.bf16 %v959_v42, %v953_v32  ;;  %v851_v52 = vadd.f32 %v850_v48, %v5247_v5  ;;  %v781_v54 = vpop.f32.mrf.mxu0  ;;  %1659 = vmatprep.subr.bf16.mxu1 %v4388_v41  ;;  %v964_v8 = vmax.f32 %v849_v20, 0.0 }
 0x11f   :  { %v852_v55 = vpop.f32.mrf.mxu1  ;;  %1561 = vmatprep.mubr.bf16.mxu1 %v981_v49  ;;  %v963_v4 = vmax.f32 %v780_v51, 0.0  ;;  %v986_v6 = vpack.c.bf16 %v962_v57, %v962_v57 }
 0x120   :  { %1632 = vmatprep.mubr.bf16.mxu0 %v983_v50  ;;  %v965_v56 = vmax.f32 %v851_v52, 0.0  ;;  %1562 = vmatmul.mubr.bf16.gmra.mxu1 %v980_v43  ;;  %v782_v5 = vpop.f32.mrf.mxu0  ;;  %v988_v7 = vpack.c.bf16 %v964_v8, %v964_v8 }
 0x121   :  { %1633 = vmatmul.mubr.bf16.gmra.mxu0 %v982_v45  ;;  %v853_v58 = vpop.f32.mrf.mxu1  ;;  %v987_v59 = vpack.c.bf16 %v963_v4, %v963_v4  ;;  %1660 = vmatpush1.bf16.msra.mxu1 %v4386_v53 }
 0x122   :  { %v989_v60 = vpack.c.bf16 %v965_v56, %v965_v56  ;;  %1661 = vmatprep.subr.bf16.mxu1 %v4391_v9 }
 0x123   :  { %1571 = vmatprep.mubr.bf16.mxu1 %v987_v59 }
 0x124   :  { %1642 = vmatprep.mubr.bf16.mxu0 %v989_v60 }
 0x125   :  { %1662 = vmatpush1.bf16.msra.mxu1 %v4389_v61 }
 0x126   :  { %1663 = vmatprep.subr.bf16.mxu1 %v4394_v0 }
 0x128   :  { %1572 = vmatmul.mubr.bf16.gmra.mxu1 %v986_v6 }
 0x129   :  { %1643 = vmatmul.mubr.bf16.gmra.mxu0 %v988_v7  ;;  %1664 = vmatpush1.bf16.msra.mxu1 %v4392_v10 }
 0x12a   :  { %1665 = vmatprep.subr.bf16.mxu1 %v4397_v11 }
 0x12d   :  { %1666 = vmatpush1.bf16.msra.mxu1 %v4395_v12 }
 0x12e   :  { %1679 = vmatprep.subr.bf16.mxu1 %v4400_v13  ;;  %v4404_v13 = vld [vmem:[%s6052_s4 + $0xa8] ss:$12 sps:$4 sm:$0xff]  }
 0x131   :  { %1680 = vmatpush2.bf16.msra.mxu1 %v4398_v14  ;;  %v4406_v14 = vld [vmem:[%s6052_s4 + $0xac] ss:$12 sps:$4 sm:$0xff]  }
 0x132   :  { %1681 = vmatprep.subr.bf16.mxu1 %v4403_v15  ;;  %v4409_v15 = vld [vmem:[%s6052_s4 + $0x94] ss:$12 sps:$4 sm:$0xff]  }
 0x135   :  { %1682 = vmatpush2.bf16.msra.mxu1 %v4401_v17  ;;  %v4410_v17 = vld [vmem:[%s6052_s4 + $0x228] ss:$12 sps:$4 sm:$0xff]  }
 0x136   :  { %2480 = vmatprep.subr.bf16.mxu1 %v4406_v14  ;;  %2542 = vmatpush1.bf16.msra.mxu0 %v4410_v17  ;;  %v4468_v17 = vld [vmem:[%s6052_s4 + $0x124] ss:$12 sps:$4 sm:$0xff]  }
 0x142   :  { %v889_v22 = vpop.f32.mrf.mxu0 }
 0x143   :  { %v890_v29 = vadd.f32 %v889_v22, %v222_v24  ;;  %v4415_v22 = vld [vmem:[%s6052_s4 + $0x7c] ss:$12 sps:$4 sm:$0xff]  }
 0x144   :  { %v891_v25 = vpop.f32.mrf.mxu0 }
 0x145   :  { %v892_v27 = vadd.f32 %v891_v25, %v226_v23  ;;  %v930_v36 = vmax.f32 %v890_v29, 0.0  ;;  %v4413_v25 = vld [vmem:[%s6052_s4 + $0x78] ss:$12 sps:$4 sm:$0xff]  }
 0x146   :  { %v893_v26 = vpop.f32.mrf.mxu0  ;;  %v4430_v29 = vld [vmem:[%s6052_s4 + $0x1e4] ss:$12 sps:$4 sm:$0xff]  }
 0x147   :  { %v894_v28 = vadd.f32 %v893_v26, %v222_v24  ;;  %v931_v34 = vmax.f32 %v892_v27, 0.0  ;;  %v4421_v26 = vld [vmem:[%s6052_s4 + $0x64] ss:$12 sps:$4 sm:$0xff]   ;;  %v4424_v27 = vld [vmem:[%s6052_s4 + $0x1fc] ss:$12 sps:$4 sm:$0xff]  }
 0x148   :  { %v895_v30 = vpop.f32.mrf.mxu0 }
 0x149   :  { %v896_v16 = vadd.f32 %v895_v30, %v226_v23  ;;  %v936_v19 = vmax.f32 %v894_v28, 0.0  ;;  %v4422_v28 = vld [vmem:[%s6052_s4 + $0x1f8] ss:$12 sps:$4 sm:$0xff]   ;;  %v4419_v30 = vld [vmem:[%s6052_s4 + $0x60] ss:$12 sps:$4 sm:$0xff]  }
 0x14a   :  { %v899_v32 = vpop.f32.mrf.mxu0 }
 0x14b   :  { %v937_v35 = vmax.f32 %v896_v16, 0.0  ;;  %v972_v31 = vpack.c.bf16 %v936_v19, %v930_v36  ;;  %v900_v1 = vadd.f32 %v899_v32, %v222_v24  ;;  %v4427_v16 = vld [vmem:[%s6052_s4 + $0x4c] ss:$12 sps:$4 sm:$0xff]   ;;  %v4434_v36 = vld [vmem:[%s6052_s4 + $0x1c8] ss:$12 sps:$4 sm:$0xff]  }
 0x14c   :  { %v901_v37 = vpop.f32.mrf.mxu0  ;;  %v4428_v19 = vld [vmem:[%s6052_s4 + $0x1e0] ss:$12 sps:$4 sm:$0xff]  }
 0x14d   :  { %v973_v38 = vpack.c.bf16 %v937_v35, %v931_v34  ;;  %v902_v39 = vadd.f32 %v901_v37, %v226_v23  ;;  %v942_v47 = vmax.f32 %v900_v1, 0.0  ;;  %v4436_v32 = vld [vmem:[%s6052_s4 + $0x1cc] ss:$12 sps:$4 sm:$0xff]   ;;  %v4425_v34 = vld [vmem:[%s6052_s4 + $0x48] ss:$12 sps:$4 sm:$0xff]  }
 0x14e   :  { %v903_v33 = vpop.f32.mrf.mxu0  ;;  %v4433_v35 = vld [vmem:[%s6052_s4 + $0x34] ss:$12 sps:$4 sm:$0xff]   ;;  %v4445_v1 = vld [vmem:[%s6052_s4 + $0x4] ss:$12 sps:$4 sm:$0xff]  }
 0x14f   :  { %v904_v40 = vadd.f32 %v903_v33, %v222_v24  ;;  %3747 = vmatprep.mubr.msk.bf16.mxu1 %vm1496_vm1, %v973_v38  ;;  %v943_v45 = vmax.f32 %v902_v39, 0.0  ;;  %v4442_v37 = vld [vmem:[%s6052_s4 + $0x1b4] ss:$12 sps:$4 sm:$0xff]   ;;  %v4431_v38 = vld [vmem:[%s6052_s4 + $0x30] ss:$12 sps:$4 sm:$0xff]  }
 0x150   :  { %v905_v41 = vpop.f32.mrf.mxu0  ;;  %1684 = vmatmul.mubr.bf16.vlgmr.msra.gmra.mxu1 %v972_v31  ;;  %v4439_v31 = vld [vmem:[%s6052_s4 + $0x1c] ss:$12 sps:$4 sm:$0xff]  }
 0x151   :  { %v906_v44 = vadd.f32 %v905_v41, %v226_v23  ;;  %v948_v42 = vmax.f32 %v904_v40, 0.0  ;;  %2481 = vmatpush1.bf16.msra.mxu1 %v4404_v13  ;;  %v4440_v33 = vld [vmem:[%s6052_s4 + $0x1b0] ss:$12 sps:$4 sm:$0xff]   ;;  %v4437_v40 = vld [vmem:[%s6052_s4 + $0x18] ss:$12 sps:$4 sm:$0xff]  }
 0x152   :  { %v909_v43 = vpop.f32.mrf.mxu0  ;;  %2482 = vmatprep.subr.bf16.mxu1 %v4409_v15  ;;  %v4448_v39 = vld [vmem:[%s6052_s4 + $0x19c] ss:$12 sps:$4 sm:$0xff]   ;;  %v4460_v15 = vld [vmem:[%s6052_s4 + $0x138] ss:$12 sps:$4 sm:$0xff]  }
 0x153   :  { %v949_v46 = vmax.f32 %v906_v44, 0.0  ;;  %v910_v20 = vadd.f32 %v909_v43, %v222_v24  ;;  %v978_v51 = vpack.c.bf16 %v948_v42, %v942_v47  ;;  %v4443_v42 = vld [vmem:[%s6052_s4] ss:$12 sps:$4 sm:$0xff]   ;;  %v4446_v43 = vld [vmem:[%s6052_s4 + $0x198] ss:$12 sps:$4 sm:$0xff]  }
 0x154   :  { %v911_v48 = vpop.f32.mrf.mxu0 }
 0x155   :  { %v979_v49 = vpack.c.bf16 %v949_v46, %v943_v45  ;;  %v912_v50 = vadd.f32 %v911_v48, %v226_v23  ;;  %v954_v54 = vmax.f32 %v910_v20, 0.0  ;;  %2483 = vmatpush1.bf16.msra.mxu1 %v4407_v21  ;;  %v4454_v46 = vld [vmem:[%s6052_s4 + $0x184] ss:$12 sps:$4 sm:$0xff]   ;;  %v1940_v48 = vld [vmem:[%s6052_s4 + $0x2e8] sm:$0xff] }
 0x156   :  { %v913_v52 = vpop.f32.mrf.mxu0  ;;  %2484 = vmatprep.subr.bf16.mxu1 %v4415_v22  ;;  %v4469_v22 = vld [vmem:[%s6052_s4 + $0x2b8] ss:$12 sps:$4 sm:$0xff]  }
 0x157   :  { %v914_v53 = vadd.f32 %v913_v52, %v222_v24  ;;  %3748 = vmatprep.mubr.msk.bf16.mxu1 %vm1496_vm1, %v979_v49  ;;  %v955_v55 = vmax.f32 %v912_v50, 0.0  ;;  %v4451_v50 = vld [vmem:[%s6052_s4 + $0x16c] ss:$12 sps:$4 sm:$0xff]  }
 0x158   :  { %v915_v9 = vpop.f32.mrf.mxu0  ;;  %1694 = vmatmul.mubr.bf16.gmra.mxu1 %v978_v51 }
 0x159   :  { %v960_v4 = vmax.f32 %v914_v53, 0.0  ;;  %v916_v56 = vadd.f32 %v915_v9, %v226_v23  ;;  %2485 = vmatpush1.bf16.msra.mxu1 %v4413_v25  ;;  %v4452_v53 = vld [vmem:[%s6052_s4 + $0x180] ss:$12 sps:$4 sm:$0xff]   ;;  %v3844_v9 = vcombine.low %v1940_v48, %v1940_v48 }
 0x15a   :  { %v919_v57 = vpop.f32.mrf.mxu0  ;;  %2486 = vmatprep.subr.bf16.mxu1 %v4421_v26  ;;  %v4466_v26 = vld [vmem:[%s6052_s4 + $0x120] ss:$12 sps:$4 sm:$0xff]  }
 0x15b   :  { %v961_v8 = vmax.f32 %v916_v56, 0.0  ;;  %v984_v5 = vpack.c.bf16 %v960_v4, %v954_v54  ;;  %v920_v58 = vadd.f32 %v919_v57, %v222_v24  ;;  %v4418_v24 = vld [vmem:[%s6052_s4 + $0x214] ss:$12 sps:$4 sm:$0xff]   ;;  %v3845_v54 = vcombine.high %v1940_v48, %v1940_v48 }
 0x15c   :  { %v921_v59 = vpop.f32.mrf.mxu0  ;;  %2543 = vmatprep.subr.bf16.mxu0 %v4418_v24  ;;  %v4449_v56 = vld [vmem:[%s6052_s4 + $0x168] ss:$12 sps:$4 sm:$0xff]  }
 0x15d   :  { %v985_v60 = vpack.c.bf16 %v961_v8, %v955_v55  ;;  %v922_v61 = vadd.f32 %v921_v59, %v226_v23  ;;  %v966_v7 = vmax.f32 %v920_v58, 0.0  ;;  %v4416_v23 = vld [vmem:[%s6052_s4 + $0x210] ss:$12 sps:$4 sm:$0xff]   ;;  %2487 = vmatpush1.bf16.msra.mxu1 %v4419_v30  ;;  %v4457_v57 = vld [vmem:[%s6052_s4 + $0x154] ss:$12 sps:$4 sm:$0xff]  }
 0x15e   :  { %v923_v0 = vpop.f32.mrf.mxu0  ;;  %2544 = vmatpush1.bf16.msra.mxu0 %v4416_v23  ;;  %2488 = vmatprep.subr.bf16.mxu1 %v4427_v16  ;;  %v4455_v58 = vld [vmem:[%s6052_s4 + $0x150] ss:$12 sps:$4 sm:$0xff]   ;;  %v4465_v59 = vld [vmem:[%s6052_s4 + $0x2d4] ss:$12 sps:$4 sm:$0xff]  }
 0x15f   :  { %3749 = vmatprep.mubr.msk.bf16.mxu1 %vm1496_vm1, %v985_v60  ;;  %v967_v6 = vmax.f32 %v922_v61, 0.0  ;;  %v990_v12 = vpack.c.bf16 %v966_v7, %v966_v7  ;;  %2545 = vmatprep.subr.bf16.mxu0 %v4424_v27  ;;  %v2472_v61 = vsel %vm80_vm0, %v3844_v9, 0  ;;  %v4462_v0 = vld [vmem:[%s6052_s4 + $0x13c] ss:$12 sps:$4 sm:$0xff]   ;;  %v4477_v23 = vld [vmem:[%s6052_s4 + $0x2a4] ss:$12 sps:$4 sm:$0xff]  }
 0x160   :  { %1704 = vmatmul.mubr.bf16.gmra.mxu1 %v984_v5  ;;  %v924_v10 = vpop.f32.mrf.mxu0  ;;  %v4475_v16 = vld [vmem:[%s6052_s4 + $0x2a0] ss:$12 sps:$4 sm:$0xff]  }
 0x161   :  { %v991_v11 = vpack.c.bf16 %v967_v6, %v967_v6  ;;  %2489 = vmatpush1.bf16.msra.mxu1 %v4425_v34  ;;  %v4463_v10 = vld [vmem:[%s6052_s4 + $0x2d0] ss:$12 sps:$4 sm:$0xff]  }
 0x162   :  { %2546 = vmatpush1.bf16.msra.mxu0 %v4422_v28  ;;  %2490 = vmatprep.subr.bf16.mxu1 %v4433_v35  ;;  %v4474_v28 = vld [vmem:[%s6052_s4 + $0x10c] ss:$12 sps:$4 sm:$0xff]  }
 0x163   :  { %3750 = vmatprep.mubr.msk.bf16.mxu1 %vm1496_vm1, %v991_v11  ;;  %2547 = vmatprep.subr.bf16.mxu0 %v4430_v29 }
 0x165   :  { %2491 = vmatpush1.bf16.msra.mxu1 %v4431_v38 }
 0x166   :  { %2548 = vmatpush1.bf16.msra.mxu0 %v4428_v19  ;;  %2492 = vmatprep.subr.bf16.mxu1 %v4439_v31 }
 0x167   :  { %2549 = vmatprep.subr.bf16.mxu0 %v4436_v32  ;;  %v4483_v32 = vld [vmem:[%s6052_s4 + $0x28c] ss:$12 sps:$4 sm:$0xff]  }
 0x168   :  { %1714 = vmatmul.mubr.bf16.gmra.mxu1 %v990_v12  ;;  %v4471_v12 = vld [vmem:[%s6052_s4 + $0x2bc] ss:$12 sps:$4 sm:$0xff]  }
 0x169   :  { %2493 = vmatpush1.bf16.msra.mxu1 %v4437_v40 }
 0x16a   :  { %2550 = vmatpush1.bf16.msra.mxu0 %v4434_v36  ;;  %2494 = vmatprep.subr.bf16.mxu1 %v4445_v1  ;;  %v4472_v36 = vld [vmem:[%s6052_s4 + $0x108] ss:$12 sps:$4 sm:$0xff]   ;;  %v4478_v1 = vld [vmem:[%s6052_s4 + $0xf0] ss:$12 sps:$4 sm:$0xff]  }
 0x16b   :  { %2551 = vmatprep.subr.bf16.mxu0 %v4442_v37  ;;  %v4480_v37 = vld [vmem:[%s6052_s4 + $0xf4] ss:$12 sps:$4 sm:$0xff]  }
 0x16d   :  { %2495 = vmatpush1.bf16.msra.mxu1 %v4443_v42 }
 0x16e   :  { %2552 = vmatpush1.bf16.msra.mxu0 %v4440_v33  ;;  %2496 = vmatprep.subr.bf16.mxu1 %v4451_v50  ;;  %v4481_v33 = vld [vmem:[%s6052_s4 + $0x288] ss:$12 sps:$4 sm:$0xff]  }
 0x16f   :  { %2553 = vmatprep.subr.bf16.mxu0 %v4448_v39  ;;  %v4486_v50 = vld [vmem:[%s6052_s4 + $0xdc] ss:$12 sps:$4 sm:$0xff]  }
 0x171   :  { %2497 = vmatpush2.bf16.msra.mxu1 %v4449_v56  ;;  %v4487_v56 = vld [vmem:[%s6052_s4 + $0x270] ss:$12 sps:$4 sm:$0xff]  }
 0x172   :  { %2554 = vmatpush1.bf16.msra.mxu0 %v4446_v43  ;;  %2498 = vmatprep.subr.bf16.mxu1 %v4457_v57  ;;  %v4492_v57 = vld [vmem:[%s6052_s4 + $0xc4] ss:$12 sps:$4 sm:$0xff]  }
 0x173   :  { %2555 = vmatprep.subr.bf16.mxu0 %v4454_v46 }
 0x175   :  { %2499 = vmatpush2.bf16.msra.mxu1 %v4455_v58 }
 0x176   :  { %2556 = vmatpush1.bf16.msra.mxu0 %v4452_v53  ;;  %2500 = vmatprep.subr.bf16.mxu1 %v4462_v0  ;;  %v4484_v53 = vld [vmem:[%s6052_s4 + $0xd8] ss:$12 sps:$4 sm:$0xff]  }
 0x177   :  { %3847 = vmatprep.subr.msk.bf16.mxu0 %vm80_vm0, %v3845_v54  ;;  %v4489_v54 = vld [vmem:[%s6052_s4 + $0x274] ss:$12 sps:$4 sm:$0xff]  }
 0x179   :  { %2501 = vmatpush2.bf16.msra.mxu1 %v4460_v15  ;;  %v4496_v15 = vld [vmem:[%s6052_s4 + $0x170] ss:$12 sps:$4 sm:$0xff]  }
 0x17a   :  { %2558 = vmatpush2.bf16.msra.mxu0 %v2472_v61  ;;  %2502 = vmatprep.subr.bf16.mxu1 %v4468_v17 }
 0x17b   :  { %2559 = vmatprep.subr.bf16.mxu0 %v4465_v59  ;;  %v4493_v59 = vld [vmem:[%s6052_s4 + $0x258] ss:$12 sps:$4 sm:$0xff]  }
 0x17d   :  { %2503 = vmatpush2.bf16.msra.mxu1 %v4466_v26 }
 0x17e   :  { %2560 = vmatpush2.bf16.msra.mxu0 %v4463_v10  ;;  %2504 = vmatprep.subr.bf16.mxu1 %v4474_v28  ;;  %v4503_v28 = vld [vmem:[%s6052_s4 + $0x2f0] ss:$0 sps:$4 sm:$0xff]  }
 0x17f   :  { %2561 = vmatprep.subr.bf16.mxu0 %v4471_v12 }
 0x181   :  { %2505 = vmatpush2.bf16.msra.mxu1 %v4472_v36 }
 0x182   :  { %2562 = vmatpush2.bf16.msra.mxu0 %v4469_v22  ;;  %2506 = vmatprep.subr.bf16.mxu1 %v4480_v37 }
 0x183   :  { %2563 = vmatprep.subr.bf16.mxu0 %v4477_v23 }
 0x185   :  { %2507 = vmatpush2.bf16.msra.mxu1 %v4478_v1 }
 0x186   :  { %2564 = vmatpush2.bf16.msra.mxu0 %v4475_v16  ;;  %2508 = vmatprep.subr.bf16.mxu1 %v4486_v50 }
 0x187   :  { %2565 = vmatprep.subr.bf16.mxu0 %v4483_v32 }
 0x189   :  { %2509 = vmatpush2.bf16.msra.mxu1 %v4484_v53 }
 0x18a   :  { %2566 = vmatpush2.bf16.msra.mxu0 %v4481_v33  ;;  %2510 = vmatprep.subr.bf16.mxu1 %v4492_v57 }
 0x18b   :  { %2567 = vmatprep.subr.bf16.mxu0 %v4489_v54 }
 0x18e   :  { %2568 = vmatpush2.bf16.msra.mxu0 %v4487_v56 }
 0x1d0   :  { %v1543_v41 = vpop.f32.mrf.mxu1 }
 0x1d1   :  { %v1614_v44 = vpop.f32.mrf.mxu0 }
 0x1d2   :  { %v5442_v45 = vadd.f32 %v1614_v44, %v1543_v41  ;;  %v1545_v47 = vpop.f32.mrf.mxu1 }
 0x1d3   :  { %v1616_v20 = vpop.f32.mrf.mxu0 }
 0x1d4   :  { %v5450_v49 = vadd.f32 %v1616_v20, %v1545_v47  ;;  %v5455_v51 = vpop.f32.mrf.mxu1 }
 0x1d5   :  { %v5457_v52 = vpop.f32.mrf.mxu0 }
 0x1d6   :  { %v5462_v55 = vpop.f32.mrf.mxu1  ;;  %v1619_v61 = vadd.f32 %v5457_v52, %v5455_v51  ;;  %v4499_v52 = vld [vmem:[%s6052_s4 + $0x244] ss:$12 sps:$4 sm:$0xff]  }
 0x1d7   :  { %v5464_v4 = vpop.f32.mrf.mxu0 }
 0x1d8   :  { %v1553_v8 = vpop.f32.mrf.mxu1 }
 0x1d9   :  { %v1624_v5 = vpop.f32.mrf.mxu0 }
 0x1da   :  { %v5478_v60 = vadd.f32 %v1624_v5, %v1553_v8  ;;  %v1555_v6 = vpop.f32.mrf.mxu1  ;;  %v4490_v8 = vld [vmem:[%s6052_s4 + $0xc0] ss:$12 sps:$4 sm:$0xff]   ;;  %v4495_v5 = vld [vmem:[%s6052_s4 + $0x25c] ss:$12 sps:$4 sm:$0xff]  }
 0x1db   :  { %v1626_v7 = vpop.f32.mrf.mxu0  ;;  %2569 = vmatprep.subr.bf16.mxu0 %v4495_v5  ;;  %2511 = vmatpush2.bf16.msra.mxu1 %v4490_v8  ;;  %v4500_v5 = vld [vmem:[%s6052_s4 + $0xb0] ss:$12 sps:$4 sm:$0xff]  }
 0x1dc   :  { %v5488_v11 = vadd.f32 %v1626_v7, %v1555_v6  ;;  %v5493_v13 = vpop.f32.mrf.mxu1  ;;  %v1621_v6 = vadd.f32 %v5464_v4, %v5462_v55  ;;  %2570 = vmatpush2.bf16.msra.mxu0 %v4493_v59  ;;  %3922 = vmatprep.subr.bf16.mxu1 %v4496_v15  ;;  %v4502_v15 = vld [vmem:[%s6052_s4 + $0x98] ss:$12 sps:$4 sm:$0xff]  }
 0x1dd   :  { %v5495_v14 = vpop.f32.mrf.mxu0  ;;  %2571 = vmatprep.subr.bf16.mxu0 %v4499_v52  ;;  %v4505_v52 = vld [vmem:[%s6052_s4 + $0x140] ss:$12 sps:$4 sm:$0xff]  }
 0x1de   :  { %v5503_v18 = vpop.f32.mrf.mxu1 }
 0x1df   :  { %v5505_v21 = vpop.f32.mrf.mxu0 }
 0x1e0   :  { %v1563_v24 = vpop.f32.mrf.mxu1 }
 0x1e1   :  { %v1634_v25 = vpop.f32.mrf.mxu0 }
 0x1e2   :  { %v5516_v27 = vadd.f32 %v1634_v25, %v1563_v24  ;;  %v1565_v29 = vpop.f32.mrf.mxu1 }
 0x1e3   :  { %v1636_v30 = vpop.f32.mrf.mxu0 }
 0x1e4   :  { %v5524_v19 = vadd.f32 %v1636_v30, %v1565_v29  ;;  %v5529_v34 = vpop.f32.mrf.mxu1  ;;  %v1631_v29 = vadd.f32 %v5505_v21, %v5503_v18 }
 0x1e5   :  { %v5531_v35 = vpop.f32.mrf.mxu0 }
 0x1e6   :  { %v5539_v38 = vpop.f32.mrf.mxu1 }
 0x1e7   :  { %v5541_v31 = vpop.f32.mrf.mxu0 }
 0x1e8   :  { %v1573_v39 = vpop.f32.mrf.mxu1 }
 0x1e9   :  { %v1644_v40 = vpop.f32.mrf.mxu0 }
 0x1ea   :  { %v5549_v41 = vadd.f32 %v1644_v40, %v1573_v39  ;;  %v1575_v44 = vpop.f32.mrf.mxu1 }
 0x1eb   :  { %v1646_v42 = vpop.f32.mrf.mxu0 }
 0x1ec   :  { %v5551_v43 = vadd.f32 %v1646_v42, %v1575_v44  ;;  %v1577_v46 = vpop.f32.mrf.mxu1 }
 0x1ed   :  { %v1648_v47 = vpop.f32.mrf.mxu0 }
 0x1ee   :  { %v1578_v20 = vpop.f32.mrf.mxu1 }
 0x1ef   :  { %v1649_v48 = vpop.f32.mrf.mxu0 }
 0x210   :  { %v1685_v9 = vpop.f32.mrf.mxu1 }
 0x211   :  { %v1686_v7 = vadd.f32 %v1685_v9, %v5442_v45  ;;  %v4497_v45 = vld [vmem:[%s6052_s4 + $0x240] ss:$12 sps:$4 sm:$0xff]  }
 0x212   :  { %v1687_v58 = vpop.f32.mrf.mxu1  ;;  %2572 = vmatpush2.bf16.msra.mxu0 %v4497_v45  ;;  %v4507_v45 = vld [vmem:[%s6052_s4 + $0x2d8] ss:$12 sps:$4 sm:$0xff]  }
 0x213   :  { %v1688_v17 = vadd.f32 %v1687_v58, %v5450_v49  ;;  %v1629_v49 = vadd.f32 %v5495_v14, %v5493_v13  ;;  %4125 = vmatprep.subr.msk.bf16.mxu0 %vm80_vm0, %v4503_v28 }
 0x214   :  { %v1689_v0 = vpop.f32.mrf.mxu1 }
 0x215   :  { %v1690_v10 = vadd.f32 %v1689_v0, %v1619_v61  ;;  %v4501_v61 = vld [vmem:[%s6052_s4 + $0x158] ss:$12 sps:$4 sm:$0xff]  }
 0x216   :  { %v1691_v12 = vpop.f32.mrf.mxu1 }
 0x217   :  { %v5586_v22 = vpack.c.bf16 %v1690_v10, %v1686_v7  ;;  %v1692_v51 = vadd.f32 %v1691_v12, %v1621_v6 }
 0x218   :  { %v1695_v55 = vpop.f32.mrf.mxu1 }
 0x219   :  { %v5594_v4 = vpack.c.bf16 %v1692_v51, %v1688_v17  ;;  %v1732_v23 = vrot.slane %v5586_v22, 4  ;;  %v1696_v30 = vadd.f32 %v1695_v55, %v5478_v60  ;;  %v1639_v60 = vadd.f32 %v5531_v35, %v5529_v34  ;;  %v4504_v51 = vld [vmem:[%s6052_s4 + $0x230] ss:$12 sps:$4 sm:$0xff]  }
 0x21a   :  { %v1697_v24 = vpop.f32.mrf.mxu1 }
 0x21b   :  { %1734 = vrot.lane.b32.xlu0 %v1732_v23, %s4590_s28  ;;  %v1733_v25 = vrot.slane %v5594_v4, 4  ;;  %v1698_v13 = vadd.f32 %v1697_v24, %v5488_v11  ;;  %v1641_v11 = vadd.f32 %v5541_v31, %v5539_v38 }
 0x21c   :  { %v1699_v26 = vpop.f32.mrf.mxu1 }
 0x21d   :  { %v1700_v16 = vadd.f32 %v1699_v26, %v1629_v49  ;;  %1736 = vrot.lane.b32.xlu1 %v1733_v25, %s4590_s28  ;;  %v4506_v25 = vld [vmem:[%s6052_s4 + $0x80] ss:$12 sps:$4 sm:$0xff]  }
 0x21e   :  { %v1701_v32 = vpop.f32.mrf.mxu1 }
 0x21f   :  { %v5610_v14 = vpack.c.bf16 %v1700_v16, %v1696_v30  ;;  %v1702_v36 = vadd.f32 %v1701_v32, %v1631_v29  ;;  %v4508_v29 = vld [vmem:[%s6052_s4 + $0x218] ss:$12 sps:$4 sm:$0xff]   ;;  %v4509_v30 = vld [vmem:[%s6052_s4 + $0x128] ss:$12 sps:$4 sm:$0xff]   ;;  %v4511_v32 = vld [vmem:[%s6052_s4 + $0x2c0] ss:$12 sps:$4 sm:$0xff]  }
 0x220   :  { %v1705_v37 = vpop.f32.mrf.mxu1 }
 0x221   :  { %v5612_v33 = vpack.c.bf16 %v1702_v36, %v1698_v13  ;;  %v1756_v39 = vrot.slane %v5610_v14, 4  ;;  %v1706_v1 = vadd.f32 %v1705_v37, %v5516_v27 }
 0x222   :  { %v1707_v40 = vpop.f32.mrf.mxu1 }
 0x223   :  { %1758 = vrot.lane.b32.xlu0 %v1756_v39, %s4590_s28  ;;  %v1757_v18 = vrot.slane %v5612_v33, 4  ;;  %v1708_v46 = vadd.f32 %v1707_v40, %v5524_v19  ;;  %v4510_v39 = vld [vmem:[%s6052_s4 + $0x68] ss:$12 sps:$4 sm:$0xff]  }
 0x224   :  { %v1709_v21 = vpop.f32.mrf.mxu1 }
 0x225   :  { %v1710_v44 = vadd.f32 %v1709_v21, %v1639_v60  ;;  %1760 = vrot.lane.b32.xlu1 %v1757_v18, %s4590_s28  ;;  %v4512_v60 = vld [vmem:[%s6052_s4 + $0x200] ss:$12 sps:$4 sm:$0xff]   ;;  %v4513_v18 = vld [vmem:[%s6052_s4 + $0x110] ss:$12 sps:$4 sm:$0xff]  }
 0x226   :  { %v1711_v42 = vpop.f32.mrf.mxu1 }
 0x227   :  { %v5624_v47 = vpack.c.bf16 %v1710_v44, %v1706_v1  ;;  %v1712_v20 = vadd.f32 %v1711_v42, %v1641_v11  ;;  %1742 = vrot.lane.b32.xlu0 %v5610_v14, %s4591_s30  ;;  %v4515_v11 = vld [vmem:[%s6052_s4 + $0x2a8] ss:$12 sps:$4 sm:$0xff]   ;;  %v4514_v44 = vld [vmem:[%s6052_s4 + $0x50] ss:$12 sps:$4 sm:$0xff]  }
 0x228   :  { %v1715_v34 = vpop.f32.mrf.mxu1 }
 0x229   :  { %v5628_v35 = vpack.c.bf16 %v1712_v20, %v1708_v46  ;;  %1744 = vrot.lane.b32.xlu1 %v5612_v33, %s4591_s30  ;;  %v1778_v27 = vrot.slane %v5624_v47, 4  ;;  %v1716_v48 = vadd.f32 %v1715_v34, %v5549_v41  ;;  %v4516_v20 = vld [vmem:[%s6052_s4 + $0x1e8] ss:$12 sps:$4 sm:$0xff]   ;;  %v4517_v34 = vld [vmem:[%s6052_s4 + $0xf8] ss:$12 sps:$4 sm:$0xff]  }
 0x22a   :  { %v1717_v38 = vpop.f32.mrf.mxu1 }
 0x22b   :  { %1780 = vrot.lane.b32.xlu0 %v1778_v27, %s4590_s28  ;;  %v1779_v19 = vrot.slane %v5628_v35, 4  ;;  %v1718_v53 = vadd.f32 %v1717_v38, %v5551_v43  ;;  %v1728_v54 = vpack.c.bf16 %v1716_v48, %v1716_v48  ;;  %v4519_v27 = vld [vmem:[%s6052_s4 + $0x290] ss:$12 sps:$4 sm:$0xff]   ;;  %v4518_v38 = vld [vmem:[%s6052_s4 + $0x38] ss:$12 sps:$4 sm:$0xff]  }
 0x22c   :  { %v1719_v31 = vpop.f32.mrf.mxu1  ;;  %v4523_v48 = vld [vmem:[%s6052_s4 + $0x278] ss:$12 sps:$4 sm:$0xff]  }
 0x22d   :  { %1782 = vrot.lane.b32.xlu1 %v1779_v19, %s4590_s28  ;;  %v1729_v9 = vpack.c.bf16 %v1718_v53, %v1718_v53  ;;  %v4520_v19 = vld [vmem:[%s6052_s4 + $0x1d0] ss:$12 sps:$4 sm:$0xff]   ;;  %v4521_v31 = vld [vmem:[%s6052_s4 + $0xe0] ss:$12 sps:$4 sm:$0xff]  }
 0x22e   :  { %v1720_v50 = vpop.f32.mrf.mxu1  ;;  %v4522_v53 = vld [vmem:[%s6052_s4 + $0x20] ss:$12 sps:$4 sm:$0xff]  }
 0x22f   :  { %1769 = vrot.lane.b32.xlu0 %v5624_v47, %s4591_s30 }
 0x231   :  { %1771 = vrot.lane.b32.xlu1 %v5628_v35, %s4591_s30 }
 0x233   :  { %1791 = vrot.lane.b32.xlu0 %v1728_v54, %s4591_s30  ;;  %v4524_v54 = vld [vmem:[%s6052_s4 + $0x1b8] ss:$12 sps:$4 sm:$0xff]  }
 0x235   :  { %1793 = vrot.lane.b32.xlu1 %v1729_v9, %s4591_s30  ;;  %v4525_v9 = vld [vmem:[%s6052_s4 + $0xc8] ss:$12 sps:$4 sm:$0xff]  }
 0x28d   :  { %v1735_v56 = vpop.permute.xlu0 %1734 }
 0x28e   :  { %v1751_v8 = vsel %vm1738_vm2, %v5594_v4, %v1735_v56 }
 0x28f   :  { %v1737_v41 = vpop.permute.xlu1 %1736 }
 0x290   :  { %v1739_v6 = vsel %vm1738_vm2, %v1735_v56, %v1737_v41  ;;  %v4527_v56 = vld [vmem:[%s6052_s4 + $0x260] ss:$12 sps:$4 sm:$0xff]   ;;  %v4526_v41 = vld [vmem:[%s6052_s4 + $0x8] ss:$12 sps:$4 sm:$0xff]  }
 0x295   :  { %v1759_v57 = vpop.permute.xlu0 %1758 }
 0x296   :  { %v1764_v43 = vsel %vm1738_vm2, %v5594_v4, %v1759_v57  ;;  %v1775_v24 = vsel %vm1738_vm2, %v5612_v33, %v1759_v57 }
 0x297   :  { %v1761_v58 = vpop.permute.xlu1 %1760  ;;  %v5652_v59 = vsel %vm80_vm0, %v1751_v8, %v1764_v43  ;;  %v4531_v8 = vld [vmem:[%s6053_s6 + $0x78] sm:$0xff]   ;;  %v4529_v43 = vld [vmem:[%s6052_s4 + $0x248] ss:$12 sps:$4 sm:$0xff]  }
 0x298   :  { %v1762_v0 = vsel %vm1738_vm2, %v1759_v57, %v1761_v58  ;;  %2512 = vmatprep.mubr.bf16.mxu1 %v5652_v59  ;;  %v4528_v57 = vld [vmem:[%s6052_s4 + $0x1a0] ss:$12 sps:$4 sm:$0xff]   ;;  %v4530_v58 = vld [vmem:[%s6052_s4 + $0x188] ss:$12 sps:$4 sm:$0xff]  }
 0x299   :  { %2513 = vmatmul.mubr.bf16.vlgmr.msra.gmra.mxu1 %v5586_v22  ;;  %v1743_v7 = vpop.permute.xlu0 %1742 }
 0x29a   :  { %3923 = vmatpush3.bf16.msra.mxu1 %v4500_v5  ;;  %v1755_v10 = vsel %vm1746_vm3, %v1739_v6, %v1743_v7  ;;  %v1766_v12 = vsel %vm1746_vm3, %v1762_v0, %v1743_v7  ;;  %v4532_v5 = vld [vmem:[%s6053_s6 + $0x38] sm:$0xff]   ;;  %v4537_v6 = vld [vmem:[%s6053_s6 + $0x60] sm:$0xff]  }
 0x29b   :  { %v1745_v17 = vpop.permute.xlu1 %1744  ;;  %3924 = vmatprep.subr.bf16.mxu1 %v4501_v61  ;;  %v5681_v23 = vsel %vm80_vm0, %v1755_v10, %v1766_v12  ;;  %v4534_v61 = vld [vmem:[%s6053_s6 + $0x30] sm:$0xff]   ;;  %v4540_v10 = vld [vmem:[%s6053_s6 + $0x18] sm:$0xff]  }
 0x29c   :  { %v5673_v55 = vsel %vm1746_vm3, %v1743_v7, %v1745_v17  ;;  %v4538_v7 = vld [vmem:[%s6053_s6 + $0x20] sm:$0xff]   ;;  %v4542_v12 = vld [vmem:[%s6053_s6 + $0x10] sm:$0xff]   ;;  %v4544_v17 = vld [vmem:[%s6053_s6 + $0x8] sm:$0xff]  }
 0x29d   :  { %3848 = vmatprep.mubr.msk.bf16.mxu0 %vm2463_vm4, %v5673_v55  ;;  %v1781_v4 = vpop.permute.xlu0 %1780 }
 0x29e   :  { %3925 = vmatpush3.bf16.msra.mxu1 %v4502_v15  ;;  %v1786_v49 = vsel %vm1738_vm2, %v5612_v33, %v1781_v4  ;;  %2574 = vmatmul.mubr.bf16.vlgmr.msra.gmra.mxu0 %v5681_v23  ;;  %v5708_v36 = vsel %vm1738_vm2, %v5628_v35, %v1781_v4  ;;  %v4543_v15 = vld [vmem:[%s6053_s6 + $0x48] sm:$0xff]  }
 0x29f   :  { %3957 = vmatpush3.bf16.msra.mxu0 %v4504_v51  ;;  %v1783_v26 = vpop.permute.xlu1 %1782  ;;  %v5692_v28 = vsel %vm80_vm0, %v1775_v24, %v1786_v49  ;;  %3926 = vmatprep.subr.bf16.mxu1 %v4505_v52  ;;  %v4545_v51 = vld [vmem:[%s6053_s6 + $0x40] sm:$0xff]  }
 0x2a0   :  { %v1784_v16 = vsel %vm1738_vm2, %v1781_v4, %v1783_v26  ;;  %2522 = vmatprep.mubr.bf16.mxu1 %v5692_v28  ;;  %3958 = vmatprep.subr.bf16.mxu0 %v4507_v45  ;;  %v4546_v52 = vld [vmem:[%s6053_s6] sm:$0xff]   ;;  %v4592_v45 = vmov 0.0   ;;  %v4548_v4 = vld [vmem:[%s6053_s6 + $0x90] sm:$0xff]  }
 0x2a1   :  { %2523 = vmatmul.mubr.bf16.gmra.mxu1 %v5610_v14  ;;  %v1770_v13 = vpop.permute.xlu0 %1769  ;;  %v4550_v24 = vld [vmem:[%s6053_s6 + $0x80] sm:$0xff]  }
 0x2a2   :  { %3927 = vmatpush3.bf16.msra.mxu1 %v4506_v25  ;;  %v1777_v37 = vsel %vm1746_vm3, %v1762_v0, %v1770_v13  ;;  %v1788_v33 = vsel %vm1746_vm3, %v1784_v16, %v1770_v13  ;;  %2532 = vmatprep.mubr.bf16.mxu1 %v5708_v36  ;;  %v4535_v0 = vld [vmem:[%s6053_s6 + $0x68] sm:$0xff]   ;;  %v5868_v25 = vld [vmem:[%s6054_s5] sm:$0x7] }
 0x2a3   :  { %3959 = vmatpush3.bf16.msra.mxu0 %v4508_v29  ;;  %v1772_v40 = vpop.permute.xlu1 %1771  ;;  %3928 = vmatprep.subr.bf16.mxu1 %v4509_v30  ;;  %v5731_v1 = vsel %vm80_vm0, %v1777_v37, %v1788_v33  ;;  %v1947_v30 = vrot.slane %v5868_v25, %v205_v3 }
 0x2a4   :  { %v5723_v21 = vsel %vm1746_vm3, %v1770_v13, %v1772_v40  ;;  %3960 = vmatprep.subr.bf16.mxu0 %v4511_v32 }
 0x2a5   :  { %3849 = vmatprep.mubr.msk.bf16.mxu0 %vm2463_vm4, %v5723_v21  ;;  %v1792_v42 = vpop.permute.xlu0 %1791 }
 0x2a6   :  { %3929 = vmatpush3.bf16.msra.mxu1 %v4510_v39  ;;  %2584 = vmatmul.mubr.bf16.gmra.mxu0 %v5731_v1  ;;  %v1800_v50 = vsel %vm1746_vm3, %v1784_v16, %v1792_v42 }
 0x2a7   :  { %3961 = vmatpush3.bf16.msra.mxu0 %v4512_v60  ;;  %v1794_v46 = vpop.permute.xlu1 %1793  ;;  %3930 = vmatprep.subr.bf16.mxu1 %v4513_v18 }
 0x2a8   :  { %v1795_v35 = vsel %vm1746_vm3, %v1792_v42, %v1794_v46  ;;  %3962 = vmatprep.subr.bf16.mxu0 %v4515_v11 }
 0x2a9   :  { %2533 = vmatmul.mubr.bf16.gmra.mxu1 %v5624_v47  ;;  %3850 = vmatprep.mubr.msk.bf16.mxu0 %vm2463_vm4, %v1795_v35 }
 0x2aa   :  { %3931 = vmatpush3.bf16.msra.mxu1 %v4514_v44  ;;  %2634 = vmatprep.mubr.bf16.mxu1 %v5652_v59  ;;  %v4533_v59 = vld [vmem:[%s6053_s6 + $0x70] sm:$0xff]  }
 0x2ab   :  { %3963 = vmatpush3.bf16.msra.mxu0 %v4516_v20  ;;  %3932 = vmatprep.subr.bf16.mxu1 %v4517_v34 }
 0x2ac   :  { %3964 = vmatprep.subr.bf16.mxu0 %v4519_v27 }
 0x2ae   :  { %3933 = vmatpush3.bf16.msra.mxu1 %v4518_v38  ;;  %2594 = vmatmul.mubr.bf16.gmra.mxu0 %v1800_v50 }
 0x2af   :  { %3965 = vmatpush3.bf16.msra.mxu0 %v4520_v19  ;;  %3851 = vmatprep.mubr.msk.bf16.mxu0 %vm2463_vm4, %v5673_v55  ;;  %v4547_v55 = vld [vmem:[%s6053_s6 + $0x98] sm:$0xff]  }
 0x2b0   :  { %3934 = vmatprep.subr.bf16.mxu1 %v4521_v31  ;;  %3966 = vmatprep.subr.bf16.mxu0 %v4523_v48 }
 0x2b2   :  { %3935 = vmatpush3.bf16.msra.mxu1 %v4522_v53 }
 0x2b3   :  { %3967 = vmatpush3.bf16.msra.mxu0 %v4524_v54  ;;  %3936 = vmatprep.subr.bf16.mxu1 %v4525_v9 }
 0x2b4   :  { %3968 = vmatprep.subr.bf16.mxu0 %v4527_v56 }
 0x2b6   :  { %3937 = vmatpush3.bf16.msra.mxu1 %v4526_v41 }
 0x2b7   :  { %3969 = vmatpush3.bf16.msra.mxu0 %v4528_v57  ;;  %3990 = vmatprep.subr.bf16.mxu1 %v4531_v8 }
 0x2b8   :  { %3970 = vmatprep.subr.bf16.mxu0 %v4529_v43 }
 0x2b9   :  { %2635 = vmatmul.mubr.bf16.vlgmr.msra.gmra.mxu1 %v5586_v22  ;;  %v4536_v22 = vld [vmem:[%s6053_s6 + $0x28] sm:$0xff]  }
 0x2ba   :  { %2642 = vmatprep.mubr.bf16.mxu1 %v5692_v28  ;;  %3991 = vmatpush3.bf16.msra.mxu1 %v4532_v5  ;;  %v1951_v28 = vrot.slane %v5868_v25, %v209_v2 }
 0x2bb   :  { %3971 = vmatpush3.bf16.msra.mxu0 %v4530_v58  ;;  %3992 = vmatprep.subr.bf16.mxu1 %v4533_v59 }
 0x2bc   :  { %4069 = vmatprep.subr.bf16.mxu0 %v4592_v45 }
 0x2be   :  { %2691 = vmatmul.mubr.bf16.vlgmr.msra.gmra.mxu0 %v5681_v23  ;;  %3993 = vmatpush3.bf16.msra.mxu1 %v4534_v61  ;;  %v4549_v23 = vld [vmem:[%s6053_s6 + $0x88] sm:$0xff]  }
 0x2bf   :  { %3852 = vmatprep.mubr.msk.bf16.mxu0 %vm2463_vm4, %v5723_v21  ;;  %3994 = vmatprep.subr.bf16.mxu1 %v4535_v0 }
 0x2c0   :  { %4070 = vmatpush3.bf16.msra.mxu0 %v4547_v55 }
 0x2c1   :  { %2643 = vmatmul.mubr.bf16.gmra.mxu1 %v5610_v14  ;;  %v4539_v14 = vld [vmem:[%s6053_s6 + $0x58] sm:$0xff]   ;;  %4071 = vmatprep.subr.bf16.mxu0 %v4592_v45 }
 0x2c2   :  { %2650 = vmatprep.mubr.bf16.mxu1 %v5708_v36  ;;  %3995 = vmatpush3.bf16.msra.mxu1 %v4536_v22 }
 0x2c3   :  { %3996 = vmatprep.subr.bf16.mxu1 %v4537_v6 }
 0x2c4   :  { %4072 = vmatpush3.bf16.msra.mxu0 %v4548_v4 }
 0x2c5   :  { %4073 = vmatprep.subr.bf16.mxu0 %v4592_v45 }
 0x2c6   :  { %2699 = vmatmul.mubr.bf16.gmra.mxu0 %v5731_v1  ;;  %3997 = vmatpush3.bf16.msra.mxu1 %v4538_v7 }
 0x2c7   :  { %3853 = vmatprep.mubr.msk.bf16.mxu0 %vm2463_vm4, %v1795_v35  ;;  %3998 = vmatprep.subr.bf16.mxu1 %v4539_v14 }
 0x2c8   :  { %4074 = vmatpush3.bf16.msra.mxu0 %v4549_v23 }
 0x2c9   :  { %2651 = vmatmul.mubr.bf16.gmra.mxu1 %v5624_v47  ;;  %v4541_v47 = vld [vmem:[%s6053_s6 + $0x50] sm:$0xff]   ;;  %4075 = vmatprep.subr.bf16.mxu0 %v4592_v45 }
 0x2ca   :  { %3999 = vmatpush3.bf16.msra.mxu1 %v4540_v10 }
 0x2cb   :  { %4000 = vmatprep.subr.bf16.mxu1 %v4541_v47 }
 0x2cc   :  { %4076 = vmatpush3.bf16.msra.mxu0 %v4550_v24 }
 0x2ce   :  { %2707 = vmatmul.mubr.bf16.gmra.mxu0 %v1800_v50  ;;  %4001 = vmatpush3.bf16.msra.mxu1 %v4542_v12 }
 0x2cf   :  { %4002 = vmatprep.subr.bf16.mxu1 %v4543_v15  ;;  %4077 = vmatprep.mubr.msk.bf16.mxu0 %vm4593_vm5, %v4592_v45 }
 0x2d2   :  { %4003 = vmatpush3.bf16.msra.mxu1 %v4544_v17 }
 0x2d3   :  { %4004 = vmatprep.subr.bf16.mxu1 %v4545_v51 }
 0x2d6   :  { %4005 = vmatpush3.bf16.msra.mxu1 %v4546_v52 }
 0x359   :  { %v2514_v49 = vpop.f32.mrf.mxu1 }
 0x35a   :  { %v2515_v39 = vadd.f32 %v2514_v49, %v1947_v30 }
 0x35b   :  { %v2516_v26 = vpop.f32.mrf.mxu1 }
 0x35c   :  { %v2517_v36 = vadd.f32 %v2516_v26, %v1951_v28 }
 0x35d   :  { %v2518_v29 = vpop.f32.mrf.mxu1 }
 0x35e   :  { %v2575_v16 = vpop.f32.mrf.mxu0  ;;  %v2519_v37 = vadd.f32 %v2518_v29, %v1947_v30 }
 0x35f   :  { %v2520_v32 = vpop.f32.mrf.mxu1  ;;  %v2576_v1 = vadd.f32 %v2575_v16, %v2515_v39 }
 0x360   :  { %v2577_v13 = vpop.f32.mrf.mxu0  ;;  %v2521_v60 = vadd.f32 %v2520_v32, %v1951_v28 }
 0x361   :  { %v2524_v33 = vpop.f32.mrf.mxu1  ;;  %v2578_v18 = vadd.f32 %v2577_v13, %v2517_v36  ;;  %v2714_v27 = vmax.f32 %v2576_v1, 0.0 }
 0x362   :  { %v2579_v40 = vpop.f32.mrf.mxu0  ;;  %v2525_v53 = vadd.f32 %v2524_v33, %v1947_v30 }
 0x363   :  { %v2580_v21 = vadd.f32 %v2579_v40, %v2519_v37  ;;  %v2526_v11 = vpop.f32.mrf.mxu1  ;;  %v2715_v34 = vmax.f32 %v2578_v18, 0.0 }
 0x364   :  { %v2581_v44 = vpop.f32.mrf.mxu0  ;;  %v2527_v19 = vadd.f32 %v2526_v11, %v1951_v28 }
 0x365   :  { %v2582_v2 = vadd.f32 %v2581_v44, %v2521_v60  ;;  %v2528_v42 = vpop.f32.mrf.mxu1  ;;  %v2717_v46 = vmax.f32 %v2580_v21, 0.0 }
 0x366   :  { %v2585_v20 = vpop.f32.mrf.mxu0  ;;  %v2529_v48 = vadd.f32 %v2528_v42, %v1947_v30 }
 0x367   :  { %v2718_v3 = vmax.f32 %v2582_v2, 0.0  ;;  %v2530_v35 = vpop.f32.mrf.mxu1  ;;  %v2729_v54 = vpack.c.bf16 %v2717_v46, %v2714_v27  ;;  %v2586_v43 = vadd.f32 %v2585_v20, %v2525_v53 }
 0x368   :  { %v2587_v38 = vpop.f32.mrf.mxu0  ;;  %v2531_v56 = vadd.f32 %v2530_v35, %v1951_v28 }
 0x369   :  { %v2730_v31 = vpack.c.bf16 %v2718_v3, %v2715_v34  ;;  %v2534_v50 = vpop.f32.mrf.mxu1  ;;  %v2588_v41 = vadd.f32 %v2587_v38, %v2527_v19  ;;  %v2720_v10 = vmax.f32 %v2586_v43, 0.0 }
 0x36a   :  { %v2589_v9 = vpop.f32.mrf.mxu0  ;;  %v2535_v47 = vadd.f32 %v2534_v50, %v1947_v30  ;;  %v1955_v30 = vrot.slane %v5868_v25, %v213_v63 }
 0x36b   :  { %v2590_v57 = vadd.f32 %v2589_v9, %v2529_v48  ;;  %v2536_v8 = vpop.f32.mrf.mxu1  ;;  %2940 = vmatprep.mubr.bf16.mxu1 %v2730_v31  ;;  %v2721_v22 = vmax.f32 %v2588_v41, 0.0 }
 0x36c   :  { %v2591_v5 = vpop.f32.mrf.mxu0  ;;  %2941 = vmatmul.mubr.bf16.vlgmr.msra.gmra.mxu1 %v2729_v54  ;;  %v2537_v6 = vadd.f32 %v2536_v8, %v1951_v28 }
 0x36d   :  { %v2592_v58 = vadd.f32 %v2591_v5, %v2531_v56  ;;  %v2538_v59 = vpop.f32.mrf.mxu1  ;;  %v2723_v61 = vmax.f32 %v2590_v57, 0.0 }
 0x36e   :  { %v2595_v0 = vpop.f32.mrf.mxu0 }
 0x36f   :  { %v2724_v7 = vmax.f32 %v2592_v58, 0.0  ;;  %v2539_v14 = vpop.f32.mrf.mxu1  ;;  %v2732_v51 = vpack.c.bf16 %v2723_v61, %v2720_v10  ;;  %v2596_v52 = vadd.f32 %v2595_v0, %v2535_v47 }
 0x370   :  { %v2597_v12 = vpop.f32.mrf.mxu0 }
 0x371   :  { %v2733_v15 = vpack.c.bf16 %v2724_v7, %v2721_v22  ;;  %v2598_v17 = vadd.f32 %v2597_v12, %v2537_v6  ;;  %v2726_v49 = vmax.f32 %v2596_v52, 0.0  ;;  %v4553_v52 = vld [vmem:[%s6055_s7 + $0x38] sm:$0xff]  }
 0x372   :  { %v2599_v55 = vpop.f32.mrf.mxu0 }
 0x373   :  { %v2727_v4 = vmax.f32 %v2598_v17, 0.0  ;;  %2948 = vmatprep.mubr.bf16.mxu1 %v2733_v15  ;;  %v2735_v29 = vpack.c.bf16 %v2726_v49, %v2726_v49  ;;  %v4594_v15 = vmov 0   ;;  %v4551_v17 = vld [vmem:[%s6055_s7 + $0xb8] sm:$0xff]   ;;  %v4554_v55 = vld [vmem:[%s6055_s7 + $0xb0] sm:$0xff]   ;;  %v4558_v49 = vld [vmem:[%s6055_s7 + $0x68] sm:$0xff]  }
 0x374   :  { %v2600_v23 = vpop.f32.mrf.mxu0  ;;  %2949 = vmatmul.mubr.bf16.gmra.mxu1 %v2732_v51  ;;  %3299 = vmatprep.subr.bf16.mxu0 %v4594_v15  ;;  %v4552_v51 = vld [vmem:[%s6055_s7 + $0x78] sm:$0xff]  }
 0x375   :  { %v2736_v24 = vpack.c.bf16 %v2727_v4, %v2727_v4  ;;  %4031 = vmatprep.subr.bf16.mxu1 %v4552_v51  ;;  %v4555_v4 = vld [vmem:[%s6055_s7 + $0x70] sm:$0xff]  }
 0x376   :  { %4032 = vmatpush3.bf16.msra.mxu1 %v4553_v52  ;;  %v4556_v23 = vld [vmem:[%s6055_s7 + $0x30] sm:$0xff]   ;;  %v4576_v52 = vld [vmem:[%s6056_s9 + $0x38] ss:$0 sps:$4 sm:$0xff]  }
 0x377   :  { %2956 = vmatprep.mubr.bf16.mxu1 %v2736_v24  ;;  %4033 = vmatprep.subr.bf16.mxu1 %v4555_v4  ;;  %v4557_v24 = vld [vmem:[%s6055_s7 + $0xa8] sm:$0xff]  }
 0x379   :  { %v3938_v26 = vpop.f32.mrf.mxu1 }
 0x37a   :  { %4034 = vmatpush3.bf16.msra.mxu1 %v4556_v23 }
 0x37b   :  { %v3939_v28 = vpop.f32.mrf.mxu1  ;;  %4035 = vmatprep.subr.bf16.mxu1 %v4558_v49  ;;  %v3412_v49 = vsel %vm80_vm0, %v4576_v52, 0 }
 0x37c   :  { %2957 = vmatmul.mubr.bf16.gmra.mxu1 %v2735_v29  ;;  %v3940_v13 = vadd.f32 %v3939_v28, %v3938_v26  ;;  %v4559_v26 = vld [vmem:[%s6055_s7 + $0x28] sm:$0xff]   ;;  %v4560_v29 = vld [vmem:[%s6055_s7 + $0xa0] sm:$0xff]  }
 0x37d   :  { %v3941_v16 = vpop.f32.mrf.mxu1  ;;  %v4561_v28 = vld [vmem:[%s6055_s7 + $0x60] sm:$0xff]  }
 0x37e   :  { %v3972_v32 = vpop.f32.mrf.mxu0  ;;  %v2637_v18 = vadd.f32 %v3940_v13, %v1955_v30  ;;  %4036 = vmatpush3.bf16.msra.mxu1 %v4559_v26  ;;  %v4565_v13 = vld [vmem:[%s6055_s7 + $0x18] sm:$0xff]  }
 0x37f   :  { %v3942_v36 = vpop.f32.mrf.mxu1  ;;  %4037 = vmatprep.subr.bf16.mxu1 %v4561_v28 }
 0x380   :  { %v3973_v37 = vpop.f32.mrf.mxu0  ;;  %v3943_v33 = vadd.f32 %v3942_v36, %v3941_v16  ;;  %v4562_v16 = vld [vmem:[%s6055_s7 + $0x20] sm:$0xff]   ;;  %v4566_v36 = vld [vmem:[%s6055_s7 + $0x90] sm:$0xff]  }
 0x381   :  { %v3974_v39 = vadd.f32 %v3973_v37, %v3972_v32  ;;  %v3944_v40 = vpop.f32.mrf.mxu1  ;;  %v4564_v32 = vld [vmem:[%s6055_s7 + $0x58] sm:$0xff]   ;;  %v4567_v37 = vld [vmem:[%s6055_s7 + $0x50] sm:$0xff]  }
 0x382   :  { %v3975_v60 = vpop.f32.mrf.mxu0  ;;  %v2640_v1 = vadd.f32 %v3943_v33, %v1955_v30  ;;  %4038 = vmatpush3.bf16.msra.mxu1 %v4562_v16  ;;  %v4568_v33 = vld [vmem:[%s6055_s7 + $0x10] sm:$0xff]  }
 0x383   :  { %v3945_v21 = vpop.f32.mrf.mxu1  ;;  %v2693_v44 = vadd.f32 %v3974_v39, %v2637_v18  ;;  %4039 = vmatprep.subr.bf16.mxu1 %v4564_v32  ;;  %v4577_v16 = vld [vmem:[%s6056_s9 + $0x30] sm:$0xff]   ;;  %v4578_v32 = vld [vmem:[%s6056_s9 + $0x28] sm:$0xff]  }
 0x384   :  { %v3976_v11 = vpop.f32.mrf.mxu0  ;;  %v3946_v20 = vadd.f32 %v3945_v21, %v3944_v40 }
 0x385   :  { %v3977_v2 = vadd.f32 %v3976_v11, %v3975_v60  ;;  %v3947_v42 = vpop.f32.mrf.mxu1  ;;  %v2716_v63 = vmax.f32 %v2693_v44, 0.0 }
 0x386   :  { %v3978_v46 = vpop.f32.mrf.mxu0  ;;  %v2645_v31 = vadd.f32 %v3946_v20, %v1955_v30  ;;  %4040 = vmatpush3.bf16.msra.mxu1 %v4565_v13  ;;  %v4580_v13 = vld [vmem:[%s6056_s9 + $0x18] sm:$0xff]  }
 0x387   :  { %v2696_v34 = vadd.f32 %v3977_v2, %v2640_v1  ;;  %v3948_v62 = vpop.f32.mrf.mxu1  ;;  %4041 = vmatprep.subr.bf16.mxu1 %v4567_v37  ;;  %v4582_v37 = vld [vmem:[%s6056_s9 + $0x8] sm:$0xff]  }
 0x388   :  { %v3979_v3 = vpop.f32.mrf.mxu0  ;;  %v3949_v35 = vadd.f32 %v3948_v62, %v3947_v42  ;;  %v4570_v62 = vld [vmem:[%s6055_s7 + $0x48] sm:$0xff]  }
 0x389   :  { %v2719_v25 = vmax.f32 %v2696_v34, 0.0  ;;  %v3980_v27 = vadd.f32 %v3979_v3, %v3978_v46  ;;  %v3950_v38 = vpop.f32.mrf.mxu1  ;;  %v4569_v34 = vld [vmem:[%s6055_s7 + $0x88] sm:$0xff]  }
 0x38a   :  { %v3981_v19 = vpop.f32.mrf.mxu0  ;;  %v2648_v54 = vadd.f32 %v3949_v35, %v1955_v30  ;;  %4042 = vmatpush3.bf16.msra.mxu1 %v4568_v33  ;;  %v4571_v3 = vld [vmem:[%s6055_s7 + $0x8] sm:$0xff]   ;;  %v4583_v33 = vld [vmem:[%s6056_s9] sm:$0xff]  }
 0x38b   :  { %v2731_v48 = vpack.c.bf16 %v2719_v25, %v2716_v63  ;;  %v3951_v50 = vpop.f32.mrf.mxu1  ;;  %v2701_v9 = vadd.f32 %v3980_v27, %v2645_v31  ;;  %v4572_v63 = vld [vmem:[%s6055_s7 + $0x80] sm:$0xff]   ;;  %4043 = vmatprep.subr.bf16.mxu1 %v4570_v62 }
 0x38c   :  { %v3982_v53 = vpop.f32.mrf.mxu0  ;;  %v3952_v56 = vadd.f32 %v3951_v50, %v3950_v38  ;;  %v4573_v27 = vld [vmem:[%s6055_s7 + $0x40] sm:$0xff]  }
 0x38d   :  { %v3983_v41 = vadd.f32 %v3982_v53, %v3981_v19  ;;  %v3953_v57 = vpop.f32.mrf.mxu1  ;;  %4078 = vmatmul.mubr.msk.bf16.vlgmr.msra.gmra.mxu0 %vm2898_vm6, %v2731_v48  ;;  %v2722_v59 = vmax.f32 %v2701_v9, 0.0  ;;  %v4574_v31 = vld [vmem:[%s6055_s7] sm:$0xff]  }
 0x38e   :  { %v3984_v8 = vpop.f32.mrf.mxu0  ;;  %4081 = vmatprep.mubr.msk.bf16.mxu0 %vm4593_vm5, %v4592_v45  ;;  %v2653_v61 = vadd.f32 %v3952_v56, %v1955_v30  ;;  %3300 = vmatpush1.bf16.msra.mxu0 %v4551_v17  ;;  %v4563_v30 = vld [vmem:[%s6055_s7 + $0x98] sm:$0xff]   ;;  %v4575_v50 = vld [vmem:[%s6055_s7 + $0xc0] sm:$0xff]   ;;  %s4595_s7 = smov 32  }
 0x38f   :  { %v2704_v43 = vadd.f32 %v3983_v41, %v2648_v54  ;;  %v3954_v5 = vpop.f32.mrf.mxu1  ;;  %3301 = vmatprep.subr.bf16.mxu0 %v4594_v15  ;;  %4044 = vmatpush3.bf16.msra.mxu1 %v4571_v3 }
 0x390   :  { %v3985_v58 = vpop.f32.mrf.mxu0  ;;  %4045 = vmatprep.subr.bf16.mxu1 %v4573_v27 }
 0x391   :  { %v2725_v0 = vmax.f32 %v2704_v43, 0.0  ;;  %v3986_v22 = vadd.f32 %v3985_v58, %v3984_v8 }
 0x392   :  { %v3987_v6 = vpop.f32.mrf.mxu0  ;;  %3302 = vmatpush1.bf16.msra.mxu0 %v4554_v55 }
 0x393   :  { %v2734_v7 = vpack.c.bf16 %v2725_v0, %v2722_v59  ;;  %v2709_v14 = vadd.f32 %v3986_v22, %v2653_v61  ;;  %3303 = vmatprep.subr.bf16.mxu0 %v4594_v15  ;;  %4046 = vmatpush3.bf16.msra.mxu1 %v4574_v31  ;;  %v3904_v31 = vld [vmem:[%s6059_s10] ss:$0 sm:$0xff] }
 0x394   :  { %v3988_v10 = vpop.f32.mrf.mxu0  ;;  %4089 = vmatprep.subr.bf16.mxu1 %v4592_v45 }
 0x395   :  { %4082 = vmatmul.mubr.msk.bf16.gmra.mxu0 %vm2898_vm6, %v2734_v7  ;;  %v2728_v47 = vmax.f32 %v2709_v14, 0.0 }
 0x396   :  { %4085 = vmatprep.mubr.msk.bf16.mxu0 %vm4593_vm5, %v4592_v45  ;;  %3304 = vmatpush1.bf16.msra.mxu0 %v4557_v24 }
 0x397   :  { %v2737_v12 = vpack.c.bf16 %v2728_v47, %v2728_v47  ;;  %3305 = vmatprep.subr.bf16.mxu0 %v4594_v15 }
 0x39a   :  { %3306 = vmatpush1.bf16.msra.mxu0 %v4560_v29 }
 0x39b   :  { %3307 = vmatprep.subr.bf16.mxu0 %v4594_v15 }
 0x39d   :  { %4086 = vmatmul.mubr.msk.bf16.gmra.mxu0 %vm2898_vm6, %v2737_v12 }
 0x39e   :  { %3308 = vmatpush1.bf16.msra.mxu0 %v4563_v30  ;;  %v4579_v30 = vld [vmem:[%s6056_s9 + $0x20] sm:$0xff]  }
 0x39f   :  { %3309 = vmatprep.subr.bf16.mxu0 %v4594_v15 }
 0x3a2   :  { %3310 = vmatpush1.bf16.msra.mxu0 %v4566_v36  ;;  %v4581_v36 = vld [vmem:[%s6056_s9 + $0x10] sm:$0xff]  }
 0x3a3   :  { %3311 = vmatprep.subr.bf16.mxu0 %v4594_v15 }
 0x3a6   :  { %3312 = vmatpush1.bf16.msra.mxu0 %v4569_v34 }
 0x3a7   :  { %3313 = vmatprep.subr.bf16.mxu0 %v4594_v15 }
 0x3aa   :  { %3314 = vmatpush1.bf16.msra.mxu0 %v4572_v63 }
 0x3ab   :  { %3329 = vmatprep.subr.bf16.mxu0 %v4594_v15 }
 0x3ae   :  { %3330 = vmatpush2.bf16.msra.mxu0 %v4575_v50 }
 0x3af   :  { %4109 = vmatprep.subr.bf16.mxu0 %v4592_v45 }
 0x42c   :  { %v4006_v39 = vpop.f32.mrf.mxu1 }
 0x42e   :  { %v4007_v40 = vpop.f32.mrf.mxu1 }
 0x42f   :  { %v4008_v38 = vadd.f32 %v4007_v40, %v4006_v39  ;;  %v4584_v39 = vld [vmem:[%s6057_s11 + $0x28] ss:$0 sps:$4 sm:$0x33]  }
 0x430   :  { %v4009_v60 = vpop.f32.mrf.mxu1  ;;  %v3513_v40 = vsel %vm3511_vm9, %v4584_v39, 0 }
 0x432   :  { %v4010_v18 = vpop.f32.mrf.mxu1 }
 0x433   :  { %v4011_v19 = vadd.f32 %v4010_v18, %v4009_v60  ;;  %v4585_v60 = vld [vmem:[%s6057_s11 + $0x20] sm:$0xff]   ;;  %v4586_v18 = vld [vmem:[%s6057_s11 + $0x18] sm:$0xff]  }
 0x434   :  { %v4012_v21 = vpop.f32.mrf.mxu1 }
 0x436   :  { %v4013_v11 = vpop.f32.mrf.mxu1 }
 0x437   :  { %v4014_v43 = vadd.f32 %v4013_v11, %v4012_v21  ;;  %v4587_v21 = vld [vmem:[%s6057_s11 + $0x10] sm:$0xff]  }
 0x438   :  { %v4015_v1 = vpop.f32.mrf.mxu1 }
 0x43a   :  { %v4016_v44 = vpop.f32.mrf.mxu1 }
 0x43b   :  { %v4017_v5 = vadd.f32 %v4016_v44, %v4015_v1  ;;  %v3877_v44 = vld [vmem:[%s6058_s8] ss:$0 sm:$0xff] }
 0x43c   :  { %v4018_v2 = vpop.f32.mrf.mxu1 }
 0x43e   :  { %v4019_v42 = vpop.f32.mrf.mxu1 }
 0x43f   :  { %v4020_v22 = vadd.f32 %v4019_v42, %v4018_v2 }
 0x440   :  { %v4021_v46 = vpop.f32.mrf.mxu1 }
 0x442   :  { %v4022_v20 = vpop.f32.mrf.mxu1 }
 0x44d   :  { %v2998_v25 = vpop.f32.mrf.mxu0 }
 0x44e   :  { %v2999_v53 = vadd.f32 %v4008_v38, %v2998_v25  ;;  %v4588_v38 = vld [vmem:[%s6057_s11 + $0x8] sm:$0xff]  }
 0x44f   :  { %v4079_v35 = vpop.f32.mrf.mxu0 }
 0x451   :  { %v3001_v48 = vpop.f32.mrf.mxu0 }
 0x452   :  { %v3002_v54 = vadd.f32 %v4011_v19, %v3001_v48  ;;  %v4589_v19 = vld [vmem:[%s6057_s11] sm:$0xff]  }
 0x453   :  { %v4080_v9 = vpop.f32.mrf.mxu0 }
 0x454   :  { %v3020_v56 = vpack.c.bf16 %v3002_v54, %v2999_v53 }
 0x455   :  { %v3006_v41 = vpop.f32.mrf.mxu0 }
 0x456   :  { %v3024_v57 = vrot.slane %v3020_v56, 4  ;;  %v3007_v59 = vadd.f32 %v4014_v43, %v3006_v41 }
 0x457   :  { %v4083_v8 = vpop.f32.mrf.mxu0 }
 0x458   :  { %3025 = vrot.lane.b32.xlu0 %v3024_v57, %s4591_s30 }
 0x459   :  { %v3009_v58 = vpop.f32.mrf.mxu0 }
 0x45a   :  { %v3010_v61 = vadd.f32 %v4017_v5, %v3009_v58 }
 0x45b   :  { %v4084_v0 = vpop.f32.mrf.mxu0 }
 0x45c   :  { %v3021_v6 = vpack.c.bf16 %v3010_v61, %v3007_v59 }
 0x45d   :  { %v3014_v7 = vpop.f32.mrf.mxu0 }
 0x45e   :  { %v3015_v14 = vadd.f32 %v4020_v22, %v3014_v7  ;;  %3028 = vrot.lane.b32.xlu1 %v3021_v6, %s4595_s7  ;;  %v3030_v10 = vrot.slane %v3021_v6, 4 }
 0x45f   :  { %v4087_v47 = vpop.f32.mrf.mxu0 }
 0x460   :  { %v3022_v12 = vpack.c.bf16 %v3015_v14, %v3015_v14  ;;  %3031 = vrot.lane.b32.xlu0 %v3030_v10, %s4596_s0 }
 0x461   :  { %v3017_v15 = vpop.f32.mrf.mxu0 }
 0x462   :  { %3034 = vrot.lane.b32.xlu1 %v3022_v12, %s4597_s15 }
 0x463   :  { %v4088_v17 = vpop.f32.mrf.mxu0 }
 0x4ca   :  { %v3026_v51 = vpop.permute.xlu0 %3025 }
 0x4cb   :  { %v3038_v26 = vsel %vm1746_vm3, %v3020_v56, %v3026_v51 }
 0x4d0   :  { %v3029_v55 = vpop.permute.xlu1 %3028 }
 0x4d1   :  { %v3041_v4 = vsel %vm1496_vm1, %v3026_v51, %v3029_v55 }
 0x4d2   :  { %v3032_v23 = vpop.permute.xlu0 %3031 }
 0x4d3   :  { %v3044_v24 = vsel %vm3042_vm7, %v3041_v4, %v3032_v23 }
 0x4d4   :  { %3291 = vmatprep.mubr.bf16.mxu1 %v3044_v24  ;;  %v3035_v29 = vpop.permute.xlu1 %3034 }
 0x4d5   :  { %v3047_v28 = vsel %vm2898_vm6, %v3032_v23, %v3035_v29  ;;  %3292 = vmatmul.mubr.bf16.vlgmr.msra.gmra.mxu1 %v3038_v26  ;;  %3903 = vmatprep.mubr.msk.bf16.mxu0 %vm3256_vm8, %v3035_v29 }
 0x4d6   :  { %3332 = vmatmul.mubr.bf16.vlgmr.msra.gmra.mxu0 %v3047_v28  ;;  %4090 = vmatpush3.bf16.msra.mxu1 %v3412_v49 }
 0x4d7   :  { %4091 = vmatprep.subr.bf16.mxu1 %v4592_v45  ;;  %4105 = vmatprep.mubr.msk.bf16.mxu1 %vm4593_vm5, %v4592_v45 }
 0x4d8   :  { %4121 = vmatprep.mubr.msk.bf16.mxu0 %vm4593_vm5, %v4592_v45  ;;  %4110 = vmatpush3.bf16.msra.mxu0 %v3513_v40 }
 0x4d9   :  { %4111 = vmatprep.subr.bf16.mxu0 %v4592_v45 }
 0x4da   :  { %4092 = vmatpush3.bf16.msra.mxu1 %v4577_v16 }
 0x4db   :  { %4093 = vmatprep.subr.bf16.mxu1 %v4592_v45 }
 0x4dc   :  { %4112 = vmatpush3.bf16.msra.mxu0 %v4585_v60 }
 0x4dd   :  { %4113 = vmatprep.subr.bf16.mxu0 %v4592_v45 }
 0x4de   :  { %4094 = vmatpush3.bf16.msra.mxu1 %v4578_v32 }
 0x4df   :  { %4095 = vmatprep.subr.bf16.mxu1 %v4592_v45 }
 0x4e0   :  { %4114 = vmatpush3.bf16.msra.mxu0 %v4586_v18 }
 0x4e1   :  { %4115 = vmatprep.subr.bf16.mxu0 %v4592_v45 }
 0x4e2   :  { %4096 = vmatpush3.bf16.msra.mxu1 %v4579_v30 }
 0x4e3   :  { %4097 = vmatprep.subr.bf16.mxu1 %v4592_v45 }
 0x4e4   :  { %4116 = vmatpush3.bf16.msra.mxu0 %v4587_v21 }
 0x4e5   :  { %4117 = vmatprep.subr.bf16.mxu0 %v4592_v45 }
 0x4e6   :  { %4098 = vmatpush3.bf16.msra.mxu1 %v4580_v13 }
 0x4e7   :  { %4099 = vmatprep.subr.bf16.mxu1 %v4592_v45 }
 0x4e8   :  { %4118 = vmatpush3.bf16.msra.mxu0 %v4588_v38 }
 0x4e9   :  { %4119 = vmatprep.subr.bf16.mxu0 %v4592_v45 }
 0x4ea   :  { %4100 = vmatpush3.bf16.msra.mxu1 %v4581_v36 }
 0x4eb   :  { %4101 = vmatprep.subr.bf16.mxu1 %v4592_v45 }
 0x4ec   :  { %4120 = vmatpush3.bf16.msra.mxu0 %v4589_v19 }
 0x4ee   :  { %4102 = vmatpush3.bf16.msra.mxu1 %v4582_v37 }
 0x4ef   :  { %4103 = vmatprep.subr.bf16.mxu1 %v4592_v45  ;;  %v3914_v45 = vld [vmem:[%s6060_s12] ss:$0 sm:$0xff] }
 0x4f2   :  { %4104 = vmatpush3.bf16.msra.mxu1 %v4583_v33 }
 0x595   :  { %v4047_v11 = vpop.f32.mrf.mxu1 }
 0x596   :  { %v3333_v1 = vpop.f32.mrf.mxu0 }
 0x597   :  { %v4048_v2 = vpop.f32.mrf.mxu1 }
 0x598   :  { %v4049_v42 = vadd.f32 %v4048_v2, %v4047_v11  ;;  %v3335_v46 = vpop.f32.mrf.mxu0 }
 0x599   :  { %v4050_v20 = vpop.f32.mrf.mxu1 }
 0x59a   :  { %v3294_v34 = vadd.f32 %v4049_v42, %v3877_v44  ;;  %v3336_v62 = vpop.f32.mrf.mxu0 }
 0x59b   :  { %v4051_v3 = vpop.f32.mrf.mxu1 }
 0x59c   :  { %v3334_v63 = vadd.f32 %v3333_v1, %v3294_v34  ;;  %v3337_v25 = vpop.f32.mrf.mxu0 }
 0x59e   :  { %v3339_v35 = vmax.f32 %v3334_v63, 0.0 }
 0x5a0   :  { %v3340_v27 = vpack.c.bf16 %v3339_v35, %v3339_v35 }
 0x5a2   :  { %4106 = vmatmul.mubr.msk.bf16.vlgmr.msra.gmra.mxu1 %vm2463_vm4, %v3340_v27 }
 0x662   :  { %v3448_v48 = vpop.f32.mrf.mxu1 }
 0x663   :  { %v3449_v50 = vadd.f32 %v3904_v31, %v3448_v48 }
 0x664   :  { %v4107_v53 = vpop.f32.mrf.mxu1 }
 0x665   :  { %v3454_v54 = vmax.f32 %v3449_v50, 0.0 }
 0x666   :  { %v3451_v9 = vpop.f32.mrf.mxu1 }
 0x667   :  { %v3455_v56 = vpack.c.bf16 %v3454_v54, %v3454_v54 }
 0x668   :  { %v4108_v41 = vpop.f32.mrf.mxu1 }
 0x669   :  { %4122 = vmatmul.mubr.msk.bf16.vlgmr.msra.gmra.mxu0 %vm3507_vm10, %v3455_v56 }
 0x729   :  { %v3549_v57 = vpop.f32.mrf.mxu0 }
 0x72a   :  { %v3550_v8 = vadd.f32 %v3914_v45, %v3549_v57 }
 0x72b   :  { %v4123_v43 = vpop.f32.mrf.mxu0 }
 0x72c   :  { %3555 = vst [vmem:[%s6061_s13] sm:$0xff] %v3550_v8 }
 0x72d   :  { %v3552_v5 = vpop.f32.mrf.mxu0 }
 0x72f   :  { %v4124_v58 = vpop.f32.mrf.mxu0 }

</bundles_post_ra>
